<compile_context>
chip_gen: v6e
topology: v6e:2x2x1
jax: 0.10.0
libtpu: 0.0.40
codegen_flags: <defaults>
</compile_context>

<pallas_src>
import functools

import jax
import jax.numpy as jnp
from jax.experimental import pallas as pl
from jax.experimental.pallas import tpu as pltpu

EPS = 1e-5


def conv1x1_bn_kernel(x_ref, w_ref, gamma_ref, beta_ref, o_ref, *, m_true):
    # x_ref:     (Cin, M)     f32   (N=1 NCHW viewed as channels x pixels)
    # w_ref:     (Cout, Cin)  f32   (PyTorch OIHW layout squeezed; contraction
    #                                on its last dim = native MXU LHS feed)
    # gamma_ref: (Cout, 1)    f32
    # beta_ref:  (Cout, 1)    f32
    # o_ref:     (Cout, M)    f32
    xb = x_ref[...].astype(jnp.bfloat16)
    wb = w_ref[...].astype(jnp.bfloat16)

    # 1x1 conv as a single MXU matmul in the (Cout, M) orientation.
    y = jnp.dot(wb, xb, preferred_element_type=jnp.float32)     # (Cout, M) f32

    # Training-mode BN statistics per channel (= per row of y), computed with
    # a numerically safe two-pass formulation.  Cross-lane sums go through the
    # otherwise-idle XLU instead of thin f32 MXU matmuls.
    inv_m = jnp.float32(1.0 / m_true)
    mean = jnp.sum(y, axis=1, keepdims=True) * inv_m             # (Cout, 1)
    centered = y - mean
    var = jnp.sum(centered * centered, axis=1, keepdims=True) * inv_m
    inv_std = jax.lax.rsqrt(var + EPS)

    # Fold the BN affine into one FMA over the (Cout, M) tile.
    scale = gamma_ref[...] * inv_std                             # (Cout, 1)
    o_ref[...] = centered * scale + beta_ref[...]


def conv1x1_bn(x_nchw, weight_oihw, gamma, beta):
    """x_nchw: (N, Cin, H, W) f32; weight_oihw: (Cout, Cin, 1, 1) f32."""
    n, cin, h, w = x_nchw.shape
    cout = weight_oihw.shape[0]
    m = n * h * w

    if n == 1:
        # Contiguous NCHW with N=1 -> (Cin, M) is a free reshape (no HBM copy).
        x_cm = x_nchw.reshape(cin, m)
    else:
        # TODO(synk): for N>1 fold this layout change into a pallas grid over N
        # instead of a wrapper-side transpose.
        x_cm = jnp.transpose(x_nchw, (1, 0, 2, 3)).reshape(cin, m)

    # Keep the PyTorch (Cout, Cin) layout and f32 dtype; cast in-kernel.
    w_mat = weight_oihw.reshape(cout, cin)
    gamma2 = gamma.reshape(cout, 1).astype(jnp.float32)
    beta2 = beta.reshape(cout, 1).astype(jnp.float32)

    kernel = functools.partial(conv1x1_bn_kernel, m_true=float(m))

    out_cm = pl.pallas_call(
        kernel,
        out_shape=jax.ShapeDtypeStruct((cout, m), jnp.float32),
        in_specs=[
            pl.BlockSpec(memory_space=pltpu.MemorySpace.VMEM),
            pl.BlockSpec(memory_space=pltpu.MemorySpace.VMEM),
            pl.BlockSpec(memory_space=pltpu.MemorySpace.VMEM),
            pl.BlockSpec(memory_space=pltpu.MemorySpace.VMEM),
        ],
        out_specs=pl.BlockSpec(memory_space=pltpu.MemorySpace.VMEM),
        compiler_params=pltpu.CompilerParams(
            vmem_limit_bytes=32 * 1024 * 1024,
        ),
    )(x_cm, w_mat, gamma2, beta2)

    if n == 1:
        # (Cout, M) is already NCHW order for N=1 -> free reshape.
        return out_cm.reshape(1, cout, h, w)
    return jnp.transpose(out_cm.reshape(cout, n, h, w), (1, 0, 2, 3))


if __name__ == "__main__":
    key = jax.random.PRNGKey(0)
    k_x, k_w = jax.random.split(key)

    N, CIN, H, W = 1, 1792, 7, 7
    COUT = 128

    x = jax.random.normal(k_x, (N, CIN, H, W), dtype=jnp.float32)
    weight = jax.random.normal(k_w, (COUT, CIN, 1, 1), dtype=jnp.float32) * 0.02
    gamma = jnp.ones((COUT,), dtype=jnp.float32)   # BatchNorm default affine weight
    beta = jnp.zeros((COUT,), dtype=jnp.float32)   # BatchNorm default affine bias

    out = jax.block_until_ready(conv1x1_bn(x, weight, gamma, beta))

    # Pure-JAX reference matched to the kernel's bf16 matmul inputs (bf16
    # products accumulate in f32, so only accumulation order differs).
    xb = x.reshape(CIN, H * W).astype(jnp.bfloat16).astype(jnp.float32)
    wb = weight.reshape(COUT, CIN).astype(jnp.bfloat16).astype(jnp.float32)
    y_ref = wb @ xb                                             # (COUT, M)
    mu = y_ref.mean(axis=1, keepdims=True)
    var = ((y_ref - mu) ** 2).mean(axis=1, keepdims=True)       # biased var
    y_ref = (y_ref - mu) / jnp.sqrt(var + EPS) * gamma[:, None] + beta[:, None]
    y_ref = y_ref.reshape(1, COUT, H, W)

    assert out.shape == (N, COUT, H, W)
    assert jnp.allclose(out, y_ref, atol=5e-3, rtol=5e-3)

    # TODO(synk): BatchNorm2d running_mean/running_var buffer updates
    # (training-mode module state) are not produced, only the activation.
    print("KERNEL_OK")
</pallas_src>

<mosaic_0001>
module attributes {stable_mosaic.version = 11 : i64} {
  func.func @conv1x1_bn_kernel(%arg0: memref<1792x49xf32, #tpu.memory_space<vmem>>, %arg1: memref<128x1792xf32, #tpu.memory_space<vmem>>, %arg2: memref<128x1xf32, #tpu.memory_space<vmem>>, %arg3: memref<128x1xf32, #tpu.memory_space<vmem>>, %arg4: memref<128x49xf32, #tpu.memory_space<vmem>>) attributes {dimension_semantics = [], scalar_prefetch = 0 : i64, scratch_operands = 0 : i64, tpu.core_type = #tpu.core_type<tc>} {
    %c0 = arith.constant 0 : index
    %c0_0 = arith.constant 0 : index
    %0 = vector.load %arg0[%c0, %c0_0] : memref<1792x49xf32, #tpu.memory_space<vmem>>, vector<1792x49xf32>
    %1 = arith.truncf %0 : vector<1792x49xf32> to vector<1792x49xbf16>
    %c0_1 = arith.constant 0 : index
    %c0_2 = arith.constant 0 : index
    %2 = vector.load %arg1[%c0_1, %c0_2] : memref<128x1792xf32, #tpu.memory_space<vmem>>, vector<128x1792xf32>
    %3 = arith.truncf %2 : vector<128x1792xf32> to vector<128x1792xbf16>
    %cst = arith.constant dense<0.000000e+00> : vector<128x49xf32>
    %4 = tpu.matmul %3, %1, %cst {dimension_numbers = #tpu.dot_dimension_numbers<[1], [0], [0], [1], [0, 0, 1, 1], [], []>} : vector<128x1792xbf16>, vector<1792x49xbf16>, vector<128x49xf32> -> vector<128x49xf32>
    %cst_3 = arith.constant dense<0.000000e+00> : vector<128xf32>
    %5 = vector.multi_reduction <add>, %4, %cst_3 [1] : vector<128x49xf32> to vector<128xf32>
    %6 = vector.shape_cast %5 : vector<128xf32> to vector<128x1xf32>
    %cst_4 = arith.constant 0.0204081628 : f32
    %7 = vector.broadcast %cst_4 : f32 to vector<128x1xf32>
    %8 = arith.mulf %6, %7 : vector<128x1xf32>
    %9 = vector.broadcast %8 : vector<128x1xf32> to vector<128x49xf32>
    %10 = arith.subf %4, %9 : vector<128x49xf32>
    %11 = arith.mulf %10, %10 : vector<128x49xf32>
    %cst_5 = arith.constant dense<0.000000e+00> : vector<128xf32>
    %12 = vector.multi_reduction <add>, %11, %cst_5 [1] : vector<128x49xf32> to vector<128xf32>
    %13 = vector.shape_cast %12 : vector<128xf32> to vector<128x1xf32>
    %cst_6 = arith.constant 0.0204081628 : f32
    %14 = vector.broadcast %cst_6 : f32 to vector<128x1xf32>
    %15 = arith.mulf %13, %14 : vector<128x1xf32>
    %cst_7 = arith.constant 9.99999974E-6 : f32
    %16 = vector.broadcast %cst_7 : f32 to vector<128x1xf32>
    %17 = arith.addf %15, %16 : vector<128x1xf32>
    %18 = math.rsqrt %17 : vector<128x1xf32>
    %c0_8 = arith.constant 0 : index
    %c0_9 = arith.constant 0 : index
    %19 = vector.load %arg2[%c0_8, %c0_9] : memref<128x1xf32, #tpu.memory_space<vmem>>, vector<128x1xf32>
    %20 = arith.mulf %19, %18 : vector<128x1xf32>
    %21 = vector.broadcast %20 : vector<128x1xf32> to vector<128x49xf32>
    %22 = arith.mulf %10, %21 : vector<128x49xf32>
    %c0_10 = arith.constant 0 : index
    %c0_11 = arith.constant 0 : index
    %23 = vector.load %arg3[%c0_10, %c0_11] : memref<128x1xf32, #tpu.memory_space<vmem>>, vector<128x1xf32>
    %24 = vector.broadcast %23 : vector<128x1xf32> to vector<128x49xf32>
    %25 = arith.addf %22, %24 : vector<128x49xf32>
    %c0_12 = arith.constant 0 : index
    %c0_13 = arith.constant 0 : index
    %26 = vector.load %arg4[%c0_12, %c0_13] : memref<128x49xf32, #tpu.memory_space<vmem>>, vector<128x49xf32>
    tpu.vector_store %arg4[%c0_12, %c0_13], %25 {strides = array<i32>} : memref<128x49xf32, #tpu.memory_space<vmem>>, vector<128x49xf32>,
    return
  }
}

</mosaic_0001>

<bundles_post_ra>
// kernel: tpu_custom_call.1
= control target key start
LH: loop header
LB: loop body
LE: loop exit
PB: predicated region body
PF: predicated region fallthrough
CT: control target
= control target key end

     0   :  { %vm1369_vm0 = vcmask 400384   ;;  %s4297_s0 = inlined_call_operand.vmem [shape: f32[1792,49], index: 0, kind: input, shape index: {}]   ;;  %s4298_s1 = inlined_call_operand.vmem [shape: f32[128,1792], index: 1, kind: input, shape index: {}]   ;;  %s4299_s3 = inlined_call_operand.vmem [shape: f32[128,1], index: 3, kind: input, shape index: {}]   ;;  %s4300_s2 = inlined_call_operand.vmem [shape: f32[128,1], index: 2, kind: input, shape index: {}]   ;;  %s4301_s4 = inlined_call_operand.vmem [shape: f32[128,49], index: 4, kind: output, shape index: {}]  }
   0x1   :  { %v48_v0 = vld [vmem:[%s4297_s0 + $0xf0] sm:$0xff]  ;;  %v49_v1 = vld [vmem:[%s4297_s0 + $0xf8] sm:$0xff]  ;;  %v46_v5 = vld [vmem:[%s4297_s0 + $0xe0] sm:$0xff] }
   0x2   :  { %v32_v2 = vld [vmem:[%s4297_s0 + $0x70] sm:$0xff]  ;;  %v257_v3 = vpack.c.bf16 %v49_v1, %v48_v0  ;;  %v33_v4 = vld [vmem:[%s4297_s0 + $0x78] sm:$0xff]  ;;  %v47_v6 = vld [vmem:[%s4297_s0 + $0xe8] sm:$0xff] }
   0x3   :  { %v249_v7 = vpack.c.bf16 %v33_v4, %v32_v2  ;;  %v256_v8 = vpack.c.bf16 %v47_v6, %v46_v5  ;;  %v30_v9 = vld [vmem:[%s4297_s0 + $0x60] sm:$0xff]  ;;  %v31_v10 = vld [vmem:[%s4297_s0 + $0x68] sm:$0xff]  ;;  %v44_v11 = vld [vmem:[%s4297_s0 + $0xd0] sm:$0xff] }
   0x4   :  { %1822 = vmatprep.subr.bf16.mxu0 %v257_v3  ;;  %2270 = vmatprep.subr.bf16.mxu1 %v257_v3  ;;  %v45_v12 = vld [vmem:[%s4297_s0 + $0xd8] sm:$0xff]  ;;  %v248_v13 = vpack.c.bf16 %v31_v10, %v30_v9  ;;  %v28_v15 = vld [vmem:[%s4297_s0 + $0x50] sm:$0xff]  ;;  %v42_v17 = vld [vmem:[%s4297_s0 + $0xc0] sm:$0xff] }
   0x5   :  { %1823 = vmatpush3.bf16.msra.mxu0 %v249_v7  ;;  %2278 = vmatpush3.bf16.msra.mxu1 %v249_v7  ;;  %v255_v14 = vpack.c.bf16 %v45_v12, %v44_v11  ;;  %v29_v16 = vld [vmem:[%s4297_s0 + $0x58] sm:$0xff]  ;;  %v43_v18 = vld [vmem:[%s4297_s0 + $0xc8] sm:$0xff]  ;;  %v26_v21 = vld [vmem:[%s4297_s0 + $0x40] sm:$0xff] }
   0x6   :  { %1824 = vmatprep.subr.bf16.mxu0 %v256_v8  ;;  %2271 = vmatprep.subr.bf16.mxu1 %v256_v8  ;;  %v247_v19 = vpack.c.bf16 %v29_v16, %v28_v15  ;;  %v254_v20 = vpack.c.bf16 %v43_v18, %v42_v17  ;;  %v27_v22 = vld [vmem:[%s4297_s0 + $0x48] sm:$0xff]  ;;  %v40_v23 = vld [vmem:[%s4297_s0 + $0xb0] sm:$0xff]  ;;  %v41_v24 = vld [vmem:[%s4297_s0 + $0xb8] sm:$0xff] }
   0x7   :  { %v355_v25 = vld [vmem:[%s4298_s1 + $0x8] sm:$0xff]  ;;  %v369_v26 = vld [vmem:[%s4298_s1 + $0x78] sm:$0xff]  ;;  %v246_v29 = vpack.c.bf16 %v27_v22, %v26_v21  ;;  %v253_v32 = vpack.c.bf16 %v41_v24, %v40_v23  ;;  %v24_v33 = vld [vmem:[%s4297_s0 + $0x30] sm:$0xff] }
   0x8   :  { %v467_v27 = vld [vmem:[%s4298_s1 + $0x388] sm:$0xff]  ;;  %v481_v28 = vld [vmem:[%s4298_s1 + $0x3f8] sm:$0xff]  ;;  %v579_v30 = vpack.c.bf16 %v369_v26, %v355_v25  ;;  %v38_v35 = vld [vmem:[%s4297_s0 + $0xa0] sm:$0xff] }
   0x9   :  { %1825 = vmatpush3.bf16.msra.mxu0 %v248_v13  ;;  %2279 = vmatpush3.bf16.msra.mxu1 %v248_v13  ;;  %v635_v31 = vpack.c.bf16 %v481_v28, %v467_v27  ;;  %v25_v34 = vld [vmem:[%s4297_s0 + $0x38] sm:$0xff]  ;;  %v39_v36 = vld [vmem:[%s4297_s0 + $0xa8] sm:$0xff]  ;;  %v22_v39 = vld [vmem:[%s4297_s0 + $0x20] sm:$0xff] }
   0xa   :  { %1826 = vmatprep.subr.bf16.mxu0 %v255_v14  ;;  %2272 = vmatprep.subr.bf16.mxu1 %v255_v14  ;;  %v245_v37 = vpack.c.bf16 %v25_v34, %v24_v33  ;;  %v252_v38 = vpack.c.bf16 %v39_v36, %v38_v35  ;;  %v23_v40 = vld [vmem:[%s4297_s0 + $0x28] sm:$0xff]  ;;  %v36_v41 = vld [vmem:[%s4297_s0 + $0x90] sm:$0xff]  ;;  %v37_v42 = vld [vmem:[%s4297_s0 + $0x98] sm:$0xff] }
   0xb   :  { %722 = vmatprep.mubr.bf16.mxu0 %v579_v30  ;;  %754 = vmatprep.mubr.bf16.mxu1 %v635_v31  ;;  %v244_v43 = vpack.c.bf16 %v23_v40, %v22_v39  ;;  %v251_v44 = vpack.c.bf16 %v37_v42, %v36_v41  ;;  %v20_v45 = vld [vmem:[%s4297_s0 + $0x10] sm:$0xff]  ;;  %v21_v46 = vld [vmem:[%s4297_s0 + $0x18] sm:$0xff]  ;;  %v34_v47 = vld [vmem:[%s4297_s0 + $0x80] sm:$0xff] }
   0xc   :  { %v35_v48 = vld [vmem:[%s4297_s0 + $0x88] sm:$0xff]  ;;  %v243_v49 = vpack.c.bf16 %v21_v46, %v20_v45  ;;  %v18_v51 = vld [vmem:[%s4297_s0] sm:$0xff]  ;;  %v80_v53 = vld [vmem:[%s4297_s0 + $0x1f0] sm:$0xff] }
   0xd   :  { %1827 = vmatpush3.bf16.msra.mxu0 %v247_v19  ;;  %2280 = vmatpush3.bf16.msra.mxu1 %v247_v19  ;;  %v250_v50 = vpack.c.bf16 %v35_v48, %v34_v47  ;;  %v19_v52 = vld [vmem:[%s4297_s0 + $0x8] sm:$0xff]  ;;  %v354_v54 = vld [vmem:[%s4298_s1] sm:$0xff]  ;;  %v81_v55 = vld [vmem:[%s4297_s0 + $0x1f8] sm:$0xff] }
   0xe   :  { %1828 = vmatprep.subr.bf16.mxu0 %v254_v20  ;;  %2273 = vmatprep.subr.bf16.mxu1 %v254_v20  ;;  %v112_v56 = vld [vmem:[%s4297_s0 + $0x2f0] sm:$0xff]  ;;  %v113_v57 = vld [vmem:[%s4297_s0 + $0x2f8] sm:$0xff]  ;;  %v466_v59 = vld [vmem:[%s4298_s1 + $0x380] sm:$0xff]  ;;  %v242_v61 = vpack.c.bf16 %v19_v52, %v18_v51  ;;  %v273_v1 = vpack.c.bf16 %v81_v55, %v80_v53 }
   0xf   :  { %v368_v58 = vld [vmem:[%s4298_s1 + $0x70] sm:$0xff]  ;;  %v65_v63 = vld [vmem:[%s4297_s0 + $0x178] sm:$0xff]  ;;  %v289_v2 = vpack.c.bf16 %v113_v57, %v112_v56  ;;  %v78_v4 = vld [vmem:[%s4297_s0 + $0x1e0] sm:$0xff] }
  0x10   :  { %v480_v60 = vld [vmem:[%s4298_s1 + $0x3f0] sm:$0xff]  ;;  %v97_v3 = vld [vmem:[%s4297_s0 + $0x278] sm:$0xff]  ;;  %v79_v5 = vld [vmem:[%s4297_s0 + $0x1e8] sm:$0xff]  ;;  %v578_v9 = vpack.c.bf16 %v368_v58, %v354_v54 }
  0x11   :  { %1829 = vmatpush3.bf16.msra.mxu0 %v246_v29  ;;  %2281 = vmatpush3.bf16.msra.mxu1 %v246_v29  ;;  %v64_v62 = vld [vmem:[%s4297_s0 + $0x170] sm:$0xff]  ;;  %v110_v6 = vld [vmem:[%s4297_s0 + $0x2e0] sm:$0xff]  ;;  %v111_v7 = vld [vmem:[%s4297_s0 + $0x2e8] sm:$0xff]  ;;  %v634_v10 = vpack.c.bf16 %v480_v60, %v466_v59  ;;  %v272_v18 = vpack.c.bf16 %v79_v5, %v78_v4 }
  0x12   :  { %1830 = vmatprep.subr.bf16.mxu0 %v253_v32  ;;  %2274 = vmatprep.subr.bf16.mxu1 %v253_v32  ;;  %v96_v0 = vld [vmem:[%s4297_s0 + $0x270] sm:$0xff]  ;;  %v383_v8 = vld [vmem:[%s4298_s1 + $0xe8] sm:$0xff]  ;;  %v397_v11 = vld [vmem:[%s4298_s1 + $0x158] sm:$0xff]  ;;  %v265_v14 = vpack.c.bf16 %v65_v63, %v64_v62  ;;  %v288_v19 = vpack.c.bf16 %v111_v7, %v110_v6 }
  0x13   :  { %v495_v12 = vld [vmem:[%s4298_s1 + $0x468] sm:$0xff]  ;;  %v509_v13 = vld [vmem:[%s4298_s1 + $0x4d8] sm:$0xff]  ;;  %v281_v15 = vpack.c.bf16 %v97_v3, %v96_v0  ;;  %v62_v16 = vld [vmem:[%s4297_s0 + $0x160] sm:$0xff]  ;;  %v593_v23 = vpack.c.bf16 %v397_v11, %v383_v8 }
  0x14   :  { %v63_v17 = vld [vmem:[%s4297_s0 + $0x168] sm:$0xff]  ;;  %v94_v20 = vld [vmem:[%s4297_s0 + $0x260] sm:$0xff]  ;;  %v76_v22 = vld [vmem:[%s4297_s0 + $0x1d0] sm:$0xff]  ;;  %v649_v24 = vpack.c.bf16 %v509_v13, %v495_v12 }
  0x15   :  { %1831 = vmatpush3.bf16.msra.mxu0 %v245_v37  ;;  %2282 = vmatpush3.bf16.msra.mxu1 %v245_v37  ;;  %v95_v21 = vld [vmem:[%s4297_s0 + $0x268] sm:$0xff]  ;;  %v382_v25 = vld [vmem:[%s4298_s1 + $0xe0] sm:$0xff]  ;;  %v77_v26 = vld [vmem:[%s4297_s0 + $0x1d8] sm:$0xff]  ;;  %v264_v32 = vpack.c.bf16 %v63_v17, %v62_v16 }
  0x16   :  { %1832 = vmatprep.subr.bf16.mxu0 %v252_v38  ;;  %2275 = vmatprep.subr.bf16.mxu1 %v252_v38  ;;  %v108_v27 = vld [vmem:[%s4297_s0 + $0x2d0] sm:$0xff]  ;;  %v109_v28 = vld [vmem:[%s4297_s0 + $0x2d8] sm:$0xff]  ;;  %v494_v30 = vld [vmem:[%s4298_s1 + $0x460] sm:$0xff]  ;;  %v280_v33 = vpack.c.bf16 %v95_v21, %v94_v20  ;;  %v271_v37 = vpack.c.bf16 %v77_v26, %v76_v22 }
  0x17   :  { %v396_v29 = vld [vmem:[%s4298_s1 + $0x150] sm:$0xff]  ;;  %v61_v35 = vld [vmem:[%s4297_s0 + $0x158] sm:$0xff]  ;;  %v287_v38 = vpack.c.bf16 %v109_v28, %v108_v27  ;;  %v74_v40 = vld [vmem:[%s4297_s0 + $0x1c0] sm:$0xff] }
  0x18   :  { %v508_v31 = vld [vmem:[%s4298_s1 + $0x4d0] sm:$0xff]  ;;  %v93_v39 = vld [vmem:[%s4297_s0 + $0x258] sm:$0xff]  ;;  %v75_v41 = vld [vmem:[%s4297_s0 + $0x1c8] sm:$0xff]  ;;  %v592_v45 = vpack.c.bf16 %v396_v29, %v382_v25 }
  0x19   :  { %1833 = vmatpush3.bf16.msra.mxu0 %v244_v43  ;;  %2283 = vmatpush3.bf16.msra.mxu1 %v244_v43  ;;  %v60_v34 = vld [vmem:[%s4297_s0 + $0x150] sm:$0xff]  ;;  %v106_v42 = vld [vmem:[%s4297_s0 + $0x2c0] sm:$0xff]  ;;  %v107_v43 = vld [vmem:[%s4297_s0 + $0x2c8] sm:$0xff]  ;;  %v648_v46 = vpack.c.bf16 %v508_v31, %v494_v30  ;;  %v270_v54 = vpack.c.bf16 %v75_v41, %v74_v40 }
  0x1a   :  { %1834 = vmatprep.subr.bf16.mxu0 %v251_v44  ;;  %2276 = vmatprep.subr.bf16.mxu1 %v251_v44  ;;  %v92_v36 = vld [vmem:[%s4297_s0 + $0x250] sm:$0xff]  ;;  %v411_v44 = vld [vmem:[%s4298_s1 + $0x1c8] sm:$0xff]  ;;  %v425_v47 = vld [vmem:[%s4298_s1 + $0x238] sm:$0xff]  ;;  %v286_v55 = vpack.c.bf16 %v107_v43, %v106_v42 }
  0x1b   :  { %v523_v48 = vld [vmem:[%s4298_s1 + $0x548] sm:$0xff]  ;;  %v279_v51 = vpack.c.bf16 %v93_v39, %v92_v36  ;;  %v58_v52 = vld [vmem:[%s4297_s0 + $0x140] sm:$0xff]  ;;  %v72_v58 = vld [vmem:[%s4297_s0 + $0x1b0] sm:$0xff]  ;;  %v607_v59 = vpack.c.bf16 %v425_v47, %v411_v44 }
  0x1c   :  { %v59_v53 = vld [vmem:[%s4297_s0 + $0x148] sm:$0xff]  ;;  %v90_v56 = vld [vmem:[%s4297_s0 + $0x240] sm:$0xff]  ;;  %v73_v62 = vld [vmem:[%s4297_s0 + $0x1b8] sm:$0xff] }
  0x1d   :  { %1835 = vmatpush3.bf16.msra.mxu0 %v243_v49  ;;  %2284 = vmatpush3.bf16.msra.mxu1 %v243_v49  ;;  %v537_v49 = vld [vmem:[%s4298_s1 + $0x5b8] sm:$0xff]  ;;  %v91_v57 = vld [vmem:[%s4297_s0 + $0x248] sm:$0xff]  ;;  %v104_v63 = vld [vmem:[%s4297_s0 + $0x2b0] sm:$0xff]  ;;  %v262_v4 = vpack.c.bf16 %v59_v53, %v58_v52 }
  0x1e   :  { %1836 = vmatprep.subr.bf16.mxu0 %v250_v50  ;;  %2277 = vmatprep.subr.bf16.mxu1 %v250_v50  ;;  %v263_v50 = vpack.c.bf16 %v61_v35, %v60_v34  ;;  %v663_v60 = vpack.c.bf16 %v537_v49, %v523_v48  ;;  %v105_v0 = vld [vmem:[%s4297_s0 + $0x2b8] sm:$0xff]  ;;  %v536_v3 = vld [vmem:[%s4298_s1 + $0x5b0] sm:$0xff]  ;;  %v278_v5 = vpack.c.bf16 %v91_v57, %v90_v56  ;;  %v70_v12 = vld [vmem:[%s4297_s0 + $0x1a0] sm:$0xff] }
  0x1f   :  { %v56_v6 = vld [vmem:[%s4297_s0 + $0x130] sm:$0xff]  ;;  %v57_v7 = vld [vmem:[%s4297_s0 + $0x138] sm:$0xff]  ;;  %v71_v13 = vld [vmem:[%s4297_s0 + $0x1a8] sm:$0xff] }
  0x20   :  { %v88_v8 = vld [vmem:[%s4297_s0 + $0x230] sm:$0xff]  ;;  %v89_v11 = vld [vmem:[%s4297_s0 + $0x238] sm:$0xff]  ;;  %v439_v16 = vld [vmem:[%s4298_s1 + $0x2a8] sm:$0xff]  ;;  %v261_v22 = vpack.c.bf16 %v57_v7, %v56_v6  ;;  %v268_v26 = vpack.c.bf16 %v71_v13, %v70_v12 }
  0x21   :  { %1837 = vmatpush3.bf16.msra.mxu0 %v242_v61  ;;  %2285 = vmatpush3.bf16.msra.mxu1 %v242_v61  ;;  %v410_v61 = vld [vmem:[%s4298_s1 + $0x1c0] sm:$0xff]  ;;  %v551_v20 = vld [vmem:[%s4298_s1 + $0x628] sm:$0xff]  ;;  %v565_v21 = vld [vmem:[%s4298_s1 + $0x698] sm:$0xff] }
  0x22   :  { %1886 = vmatprep.subr.bf16.mxu1 %v273_v1  ;;  %1950 = vmatprep.subr.bf16.mxu0 %v289_v2  ;;  %v424_v1 = vld [vmem:[%s4298_s1 + $0x230] sm:$0xff]  ;;  %v522_v2 = vld [vmem:[%s4298_s1 + $0x540] sm:$0xff]  ;;  %v55_v25 = vld [vmem:[%s4297_s0 + $0x128] sm:$0xff] }
  0x23   :  { %v606_v17 = vpack.c.bf16 %v424_v1, %v410_v61  ;;  %v86_v28 = vld [vmem:[%s4297_s0 + $0x220] sm:$0xff]  ;;  %v87_v29 = vld [vmem:[%s4297_s0 + $0x228] sm:$0xff]  ;;  %v68_v30 = vld [vmem:[%s4297_s0 + $0x190] sm:$0xff] }
  0x24   :  { %723 = vmatmul.mubr.bf16.vlgmr.msra.gmra.mxu0 %v578_v9  ;;  %755 = vmatmul.mubr.bf16.vlgmr.msra.gmra.mxu1 %v634_v10  ;;  %v269_v9 = vpack.c.bf16 %v73_v62, %v72_v58  ;;  %v285_v10 = vpack.c.bf16 %v105_v0, %v104_v63  ;;  %v69_v34 = vld [vmem:[%s4297_s0 + $0x198] sm:$0xff]  ;;  %v100_v35 = vld [vmem:[%s4297_s0 + $0x290] sm:$0xff]  ;;  %v276_v41 = vpack.c.bf16 %v87_v29, %v86_v28  ;;  %v66_v48 = vld [vmem:[%s4297_s0 + $0x180] sm:$0xff] }
  0x25   :  { %1887 = vmatpush3.bf16.msra.mxu1 %v265_v14  ;;  %1951 = vmatpush3.bf16.msra.mxu0 %v281_v15  ;;  %v102_v14 = vld [vmem:[%s4297_s0 + $0x2a0] sm:$0xff]  ;;  %v103_v15 = vld [vmem:[%s4297_s0 + $0x2a8] sm:$0xff]  ;;  %v101_v36 = vld [vmem:[%s4297_s0 + $0x298] sm:$0xff] }
  0x26   :  { %1888 = vmatprep.subr.bf16.mxu1 %v272_v18  ;;  %1952 = vmatprep.subr.bf16.mxu0 %v288_v19  ;;  %v662_v18 = vpack.c.bf16 %v536_v3, %v522_v2  ;;  %v453_v19 = vld [vmem:[%s4298_s1 + $0x318] sm:$0xff]  ;;  %v284_v27 = vpack.c.bf16 %v103_v15, %v102_v14  ;;  %v564_v39 = vld [vmem:[%s4298_s1 + $0x690] sm:$0xff]  ;;  %v67_v49 = vld [vmem:[%s4297_s0 + $0x188] sm:$0xff] }
  0x27   :  { %730 = vmatprep.mubr.bf16.mxu0 %v593_v23  ;;  %762 = vmatprep.mubr.bf16.mxu1 %v649_v24  ;;  %v277_v23 = vpack.c.bf16 %v89_v11, %v88_v8  ;;  %v54_v24 = vld [vmem:[%s4297_s0 + $0x120] sm:$0xff]  ;;  %v621_v31 = vpack.c.bf16 %v453_v19, %v439_v16  ;;  %v52_v42 = vld [vmem:[%s4297_s0 + $0x110] sm:$0xff]  ;;  %v53_v43 = vld [vmem:[%s4297_s0 + $0x118] sm:$0xff]  ;;  %v266_v62 = vpack.c.bf16 %v67_v49, %v66_v48 }
  0x28   :  { %v260_v40 = vpack.c.bf16 %v55_v25, %v54_v24  ;;  %v84_v44 = vld [vmem:[%s4297_s0 + $0x210] sm:$0xff]  ;;  %v85_v47 = vld [vmem:[%s4297_s0 + $0x218] sm:$0xff]  ;;  %v359_v56 = vld [vmem:[%s4298_s1 + $0x28] sm:$0xff]  ;;  %v259_v58 = vpack.c.bf16 %v53_v43, %v52_v42 }
  0x29   :  { %1889 = vmatpush3.bf16.msra.mxu1 %v264_v32  ;;  %1953 = vmatpush3.bf16.msra.mxu0 %v280_v33  ;;  %v677_v32 = vpack.c.bf16 %v565_v21, %v551_v20  ;;  %v438_v33 = vld [vmem:[%s4298_s1 + $0x2a0] sm:$0xff]  ;;  %v357_v52 = vld [vmem:[%s4298_s1 + $0x18] sm:$0xff]  ;;  %v51_v61 = vld [vmem:[%s4297_s0 + $0x108] sm:$0xff] }
  0x2a   :  { %1890 = vmatprep.subr.bf16.mxu1 %v271_v37  ;;  %1954 = vmatprep.subr.bf16.mxu0 %v287_v38  ;;  %v452_v37 = vld [vmem:[%s4298_s1 + $0x310] sm:$0xff]  ;;  %v550_v38 = vld [vmem:[%s4298_s1 + $0x620] sm:$0xff]  ;;  %v373_v57 = vld [vmem:[%s4298_s1 + $0x98] sm:$0xff] }
  0x2b   :  { %v620_v53 = vpack.c.bf16 %v452_v37, %v438_v33  ;;  %v82_v0 = vld [vmem:[%s4297_s0 + $0x200] sm:$0xff]  ;;  %v83_v1 = vld [vmem:[%s4297_s0 + $0x208] sm:$0xff]  ;;  %v144_v2 = vld [vmem:[%s4297_s0 + $0x3f0] sm:$0xff] }
  0x2c   :  { %731 = vmatmul.mubr.bf16.gmra.mxu0 %v592_v45  ;;  %763 = vmatmul.mubr.bf16.gmra.mxu1 %v648_v46  ;;  %v267_v45 = vpack.c.bf16 %v69_v34, %v68_v30  ;;  %v283_v46 = vpack.c.bf16 %v101_v36, %v100_v35  ;;  %v145_v6 = vld [vmem:[%s4297_s0 + $0x3f8] sm:$0xff]  ;;  %v176_v7 = vld [vmem:[%s4297_s0 + $0x4f0] sm:$0xff]  ;;  %v274_v13 = vpack.c.bf16 %v83_v1, %v82_v0  ;;  %v399_v21 = vld [vmem:[%s4298_s1 + $0x168] sm:$0xff] }
  0x2d   :  { %1891 = vmatpush3.bf16.msra.mxu1 %v263_v50  ;;  %1955 = vmatpush3.bf16.msra.mxu0 %v279_v51  ;;  %v98_v50 = vld [vmem:[%s4297_s0 + $0x280] sm:$0xff]  ;;  %v99_v51 = vld [vmem:[%s4297_s0 + $0x288] sm:$0xff]  ;;  %v177_v8 = vld [vmem:[%s4297_s0 + $0x4f8] sm:$0xff] }
  0x2e   :  { %1892 = vmatprep.subr.bf16.mxu1 %v270_v54  ;;  %1956 = vmatprep.subr.bf16.mxu0 %v286_v55  ;;  %v676_v54 = vpack.c.bf16 %v564_v39, %v550_v38  ;;  %v371_v55 = vld [vmem:[%s4298_s1 + $0x88] sm:$0xff]  ;;  %v282_v63 = vpack.c.bf16 %v99_v51, %v98_v50  ;;  %v372_v11 = vld [vmem:[%s4298_s1 + $0x90] sm:$0xff]  ;;  %v129_v15 = vld [vmem:[%s4297_s0 + $0x378] sm:$0xff] }
  0x2f   :  { %738 = vmatprep.mubr.bf16.mxu0 %v607_v59  ;;  %770 = vmatprep.mubr.bf16.mxu1 %v663_v60  ;;  %v275_v59 = vpack.c.bf16 %v85_v47, %v84_v44  ;;  %v50_v60 = vld [vmem:[%s4297_s0 + $0x100] sm:$0xff]  ;;  %v581_v3 = vpack.c.bf16 %v371_v55, %v357_v52  ;;  %v128_v14 = vld [vmem:[%s4297_s0 + $0x370] sm:$0xff]  ;;  %v161_v19 = vld [vmem:[%s4297_s0 + $0x478] sm:$0xff] }
  0x30   :  { %v258_v12 = vpack.c.bf16 %v51_v61, %v50_v60  ;;  %v160_v16 = vld [vmem:[%s4297_s0 + $0x470] sm:$0xff]  ;;  %v385_v20 = vld [vmem:[%s4298_s1 + $0xf8] sm:$0xff]  ;;  %v142_v24 = vld [vmem:[%s4297_s0 + $0x3e0] sm:$0xff]  ;;  %v297_v30 = vpack.c.bf16 %v129_v15, %v128_v14 }
  0x31   :  { %1893 = vmatpush3.bf16.msra.mxu1 %v262_v4  ;;  %1957 = vmatpush3.bf16.msra.mxu0 %v278_v5  ;;  %v583_v4 = vpack.c.bf16 %v373_v57, %v359_v56  ;;  %v356_v5 = vld [vmem:[%s4298_s1 + $0x10] sm:$0xff]  ;;  %v174_v28 = vld [vmem:[%s4297_s0 + $0x4e0] sm:$0xff]  ;;  %v175_v29 = vld [vmem:[%s4297_s0 + $0x4e8] sm:$0xff]  ;;  %v595_v34 = vpack.c.bf16 %v399_v21, %v385_v20 }
  0x32   :  { %1894 = vmatprep.subr.bf16.mxu1 %v269_v9  ;;  %1958 = vmatprep.subr.bf16.mxu0 %v285_v10  ;;  %v370_v9 = vld [vmem:[%s4298_s1 + $0x80] sm:$0xff]  ;;  %v127_v33 = vld [vmem:[%s4297_s0 + $0x368] sm:$0xff]  ;;  %v140_v38 = vld [vmem:[%s4297_s0 + $0x3d0] sm:$0xff] }
  0x33   :  { %v358_v10 = vld [vmem:[%s4298_s1 + $0x20] sm:$0xff]  ;;  %v580_v25 = vpack.c.bf16 %v370_v9, %v356_v5  ;;  %v159_v37 = vld [vmem:[%s4297_s0 + $0x468] sm:$0xff]  ;;  %v384_v39 = vld [vmem:[%s4298_s1 + $0xf0] sm:$0xff] }
  0x34   :  { %739 = vmatmul.mubr.bf16.gmra.mxu0 %v606_v17  ;;  %771 = vmatmul.mubr.bf16.gmra.mxu1 %v662_v18  ;;  %v305_v17 = vpack.c.bf16 %v145_v6, %v144_v2  ;;  %v321_v18 = vpack.c.bf16 %v177_v8, %v176_v7  ;;  %v158_v36 = vld [vmem:[%s4297_s0 + $0x460] sm:$0xff]  ;;  %v141_v42 = vld [vmem:[%s4297_s0 + $0x3d8] sm:$0xff]  ;;  %v172_v43 = vld [vmem:[%s4297_s0 + $0x4d0] sm:$0xff] }
  0x35   :  { %1895 = vmatpush3.bf16.msra.mxu1 %v261_v22  ;;  %1959 = vmatpush3.bf16.msra.mxu0 %v277_v23  ;;  %v387_v22 = vld [vmem:[%s4298_s1 + $0x108] sm:$0xff]  ;;  %v401_v23 = vld [vmem:[%s4298_s1 + $0x178] sm:$0xff]  ;;  %v400_v47 = vld [vmem:[%s4298_s1 + $0x170] sm:$0xff]  ;;  %v312_v49 = vpack.c.bf16 %v159_v37, %v158_v36 }
  0x36   :  { %1896 = vmatprep.subr.bf16.mxu1 %v268_v26  ;;  %1960 = vmatprep.subr.bf16.mxu0 %v284_v27  ;;  %v582_v26 = vpack.c.bf16 %v372_v11, %v358_v10  ;;  %v143_v27 = vld [vmem:[%s4297_s0 + $0x3e8] sm:$0xff]  ;;  %v597_v35 = vpack.c.bf16 %v401_v23, %v387_v22  ;;  %v173_v44 = vld [vmem:[%s4297_s0 + $0x4d8] sm:$0xff]  ;;  %v124_v55 = vld [vmem:[%s4297_s0 + $0x350] sm:$0xff] }
  0x37   :  { %746 = vmatprep.mubr.bf16.mxu0 %v621_v31  ;;  %778 = vmatprep.mubr.bf16.mxu1 %v677_v32  ;;  %v313_v31 = vpack.c.bf16 %v161_v19, %v160_v16  ;;  %v126_v32 = vld [vmem:[%s4297_s0 + $0x360] sm:$0xff]  ;;  %v413_v50 = vld [vmem:[%s4298_s1 + $0x1d8] sm:$0xff]  ;;  %v427_v51 = vld [vmem:[%s4298_s1 + $0x248] sm:$0xff]  ;;  %v319_v57 = vpack.c.bf16 %v173_v44, %v172_v43 }
  0x38   :  { %v296_v48 = vpack.c.bf16 %v127_v33, %v126_v32  ;;  %v415_v52 = vld [vmem:[%s4298_s1 + $0x1e8] sm:$0xff]  ;;  %v125_v56 = vld [vmem:[%s4297_s0 + $0x358] sm:$0xff]  ;;  %v138_v60 = vld [vmem:[%s4297_s0 + $0x3c0] sm:$0xff]  ;;  %v609_v2 = vpack.c.bf16 %v427_v51, %v413_v50 }
  0x39   :  { %1897 = vmatpush3.bf16.msra.mxu1 %v260_v40  ;;  %1961 = vmatpush3.bf16.msra.mxu0 %v276_v41  ;;  %v304_v40 = vpack.c.bf16 %v143_v27, %v142_v24  ;;  %v320_v41 = vpack.c.bf16 %v175_v29, %v174_v28  ;;  %v170_v0 = vld [vmem:[%s4297_s0 + $0x4c0] sm:$0xff]  ;;  %v171_v1 = vld [vmem:[%s4297_s0 + $0x4c8] sm:$0xff]  ;;  %v412_v8 = vld [vmem:[%s4298_s1 + $0x1d0] sm:$0xff] }
  0x3a   :  { %1898 = vmatprep.subr.bf16.mxu1 %v267_v45  ;;  %1962 = vmatprep.subr.bf16.mxu0 %v283_v46  ;;  %v398_v45 = vld [vmem:[%s4298_s1 + $0x160] sm:$0xff]  ;;  %v123_v7 = vld [vmem:[%s4297_s0 + $0x348] sm:$0xff]  ;;  %v428_v11 = vld [vmem:[%s4298_s1 + $0x250] sm:$0xff] }
  0x3b   :  { %v386_v46 = vld [vmem:[%s4298_s1 + $0x100] sm:$0xff]  ;;  %v594_v61 = vpack.c.bf16 %v398_v45, %v384_v39  ;;  %v155_v15 = vld [vmem:[%s4297_s0 + $0x448] sm:$0xff]  ;;  %v136_v16 = vld [vmem:[%s4297_s0 + $0x3b0] sm:$0xff] }
  0x3c   :  { %747 = vmatmul.mubr.bf16.gmra.mxu0 %v620_v53  ;;  %779 = vmatmul.mubr.bf16.gmra.mxu1 %v676_v54  ;;  %v429_v53 = vld [vmem:[%s4298_s1 + $0x258] sm:$0xff]  ;;  %v303_v54 = vpack.c.bf16 %v141_v42, %v140_v38  ;;  %v122_v6 = vld [vmem:[%s4297_s0 + $0x340] sm:$0xff]  ;;  %v455_v21 = vld [vmem:[%s4298_s1 + $0x328] sm:$0xff] }
  0x3d   :  { %1899 = vmatpush3.bf16.msra.mxu1 %v259_v58  ;;  %1963 = vmatpush3.bf16.msra.mxu0 %v275_v59  ;;  %v156_v58 = vld [vmem:[%s4297_s0 + $0x450] sm:$0xff]  ;;  %v157_v59 = vld [vmem:[%s4297_s0 + $0x458] sm:$0xff]  ;;  %v426_v9 = vld [vmem:[%s4298_s1 + $0x240] sm:$0xff]  ;;  %v294_v24 = vpack.c.bf16 %v123_v7, %v122_v6 }
  0x3e   :  { %1900 = vmatprep.subr.bf16.mxu1 %v266_v62  ;;  %1964 = vmatprep.subr.bf16.mxu0 %v282_v63  ;;  %v596_v62 = vpack.c.bf16 %v400_v47, %v386_v46  ;;  %v139_v63 = vld [vmem:[%s4297_s0 + $0x3c8] sm:$0xff]  ;;  %v311_v5 = vpack.c.bf16 %v157_v59, %v156_v58  ;;  %v414_v10 = vld [vmem:[%s4298_s1 + $0x1e0] sm:$0xff]  ;;  %v169_v19 = vld [vmem:[%s4297_s0 + $0x4b8] sm:$0xff]  ;;  %v608_v33 = vpack.c.bf16 %v426_v9, %v412_v8 }
  0x3f   :  { %819 = vmatprep.mubr.bf16.mxu1 %v581_v3  ;;  %916 = vmatprep.mubr.bf16.mxu0 %v583_v4  ;;  %v611_v3 = vpack.c.bf16 %v429_v53, %v415_v52  ;;  %v295_v4 = vpack.c.bf16 %v125_v56, %v124_v55  ;;  %v154_v14 = vld [vmem:[%s4297_s0 + $0x440] sm:$0xff]  ;;  %v441_v20 = vld [vmem:[%s4298_s1 + $0x2b8] sm:$0xff]  ;;  %v443_v22 = vld [vmem:[%s4298_s1 + $0x2c8] sm:$0xff] }
  0x40   :  { %v457_v23 = vld [vmem:[%s4298_s1 + $0x338] sm:$0xff]  ;;  %v134_v32 = vld [vmem:[%s4297_s0 + $0x3a0] sm:$0xff]  ;;  %v167_v37 = vld [vmem:[%s4297_s0 + $0x4a8] sm:$0xff]  ;;  %v623_v38 = vpack.c.bf16 %v455_v21, %v441_v20 }
  0x41   :  { %1901 = vmatpush3.bf16.msra.mxu1 %v258_v12  ;;  %1965 = vmatpush3.bf16.msra.mxu0 %v274_v13  ;;  %v302_v12 = vpack.c.bf16 %v139_v63, %v138_v60  ;;  %v318_v13 = vpack.c.bf16 %v171_v1, %v170_v0  ;;  %v121_v27 = vld [vmem:[%s4297_s0 + $0x338] sm:$0xff]  ;;  %v166_v36 = vld [vmem:[%s4297_s0 + $0x4a0] sm:$0xff]  ;;  %v625_v39 = vpack.c.bf16 %v457_v23, %v443_v22  ;;  %v119_v43 = vld [vmem:[%s4297_s0 + $0x328] sm:$0xff] }
  0x42   :  { %2014 = vmatprep.subr.bf16.mxu1 %v305_v17  ;;  %2078 = vmatprep.subr.bf16.mxu0 %v321_v18  ;;  %v137_v17 = vld [vmem:[%s4297_s0 + $0x3b8] sm:$0xff]  ;;  %v168_v18 = vld [vmem:[%s4297_s0 + $0x4b0] sm:$0xff]  ;;  %v118_v42 = vld [vmem:[%s4297_s0 + $0x320] sm:$0xff] }
  0x43   :  { %v301_v28 = vpack.c.bf16 %v137_v17, %v136_v16  ;;  %v317_v29 = vpack.c.bf16 %v169_v19, %v168_v18  ;;  %v440_v44 = vld [vmem:[%s4298_s1 + $0x2b0] sm:$0xff]  ;;  %v454_v45 = vld [vmem:[%s4298_s1 + $0x320] sm:$0xff]  ;;  %v151_v51 = vld [vmem:[%s4297_s0 + $0x428] sm:$0xff]  ;;  %v292_v60 = vpack.c.bf16 %v119_v43, %v118_v42 }
  0x44   :  { %820 = vmatmul.mubr.bf16.vlgmr.msra.gmra.mxu1 %v580_v25  ;;  %917 = vmatmul.mubr.bf16.vlgmr.msra.gmra.mxu0 %v582_v26  ;;  %v310_v25 = vpack.c.bf16 %v155_v15, %v154_v14  ;;  %v120_v26 = vld [vmem:[%s4297_s0 + $0x330] sm:$0xff]  ;;  %v442_v46 = vld [vmem:[%s4298_s1 + $0x2c0] sm:$0xff]  ;;  %v133_v53 = vld [vmem:[%s4297_s0 + $0x398] sm:$0xff] }
  0x45   :  { %2015 = vmatpush3.bf16.msra.mxu1 %v297_v30  ;;  %2079 = vmatpush3.bf16.msra.mxu0 %v313_v31  ;;  %v152_v30 = vld [vmem:[%s4297_s0 + $0x430] sm:$0xff]  ;;  %v153_v31 = vld [vmem:[%s4297_s0 + $0x438] sm:$0xff]  ;;  %v150_v50 = vld [vmem:[%s4297_s0 + $0x420] sm:$0xff] }
  0x46   :  { %827 = vmatprep.mubr.bf16.mxu1 %v595_v34  ;;  %924 = vmatprep.mubr.bf16.mxu0 %v597_v35  ;;  %v610_v34 = vpack.c.bf16 %v428_v11, %v414_v10  ;;  %v135_v35 = vld [vmem:[%s4297_s0 + $0x3a8] sm:$0xff]  ;;  %v456_v47 = vld [vmem:[%s4298_s1 + $0x330] sm:$0xff]  ;;  %v165_v55 = vld [vmem:[%s4297_s0 + $0x498] sm:$0xff] }
  0x47   :  { %2016 = vmatprep.subr.bf16.mxu1 %v304_v40  ;;  %2080 = vmatprep.subr.bf16.mxu0 %v320_v41  ;;  %v293_v40 = vpack.c.bf16 %v121_v27, %v120_v26  ;;  %v309_v41 = vpack.c.bf16 %v153_v31, %v152_v30  ;;  %v132_v52 = vld [vmem:[%s4297_s0 + $0x390] sm:$0xff]  ;;  %v469_v56 = vld [vmem:[%s4298_s1 + $0x398] sm:$0xff]  ;;  %v471_v58 = vld [vmem:[%s4298_s1 + $0x3a8] sm:$0xff]  ;;  %v624_v6 = vpack.c.bf16 %v456_v47, %v442_v46 }
  0x48   :  { %v485_v59 = vld [vmem:[%s4298_s1 + $0x418] sm:$0xff]  ;;  %v299_v0 = vpack.c.bf16 %v133_v53, %v132_v52  ;;  %v131_v7 = vld [vmem:[%s4297_s0 + $0x388] sm:$0xff]  ;;  %v162_v8 = vld [vmem:[%s4297_s0 + $0x480] sm:$0xff] }
  0x49   :  { %2017 = vmatpush3.bf16.msra.mxu1 %v296_v48  ;;  %2081 = vmatpush3.bf16.msra.mxu0 %v312_v49  ;;  %v300_v48 = vpack.c.bf16 %v135_v35, %v134_v32  ;;  %v316_v49 = vpack.c.bf16 %v167_v37, %v166_v36  ;;  %v117_v63 = vld [vmem:[%s4297_s0 + $0x318] sm:$0xff]  ;;  %v163_v9 = vld [vmem:[%s4297_s0 + $0x488] sm:$0xff]  ;;  %v639_v11 = vpack.c.bf16 %v485_v59, %v471_v58  ;;  %v114_v14 = vld [vmem:[%s4297_s0 + $0x300] sm:$0xff] }
  0x4a   :  { %2018 = vmatprep.subr.bf16.mxu1 %v303_v54  ;;  %2082 = vmatprep.subr.bf16.mxu0 %v319_v57  ;;  %v164_v54 = vld [vmem:[%s4297_s0 + $0x490] sm:$0xff]  ;;  %v483_v57 = vld [vmem:[%s4298_s1 + $0x408] sm:$0xff]  ;;  %v482_v17 = vld [vmem:[%s4298_s1 + $0x400] sm:$0xff]  ;;  %v314_v19 = vpack.c.bf16 %v163_v9, %v162_v8 }
  0x4b   :  { %v315_v1 = vpack.c.bf16 %v165_v55, %v164_v54  ;;  %v637_v10 = vpack.c.bf16 %v483_v57, %v469_v56  ;;  %v115_v15 = vld [vmem:[%s4297_s0 + $0x308] sm:$0xff]  ;;  %v468_v16 = vld [vmem:[%s4298_s1 + $0x390] sm:$0xff]  ;;  %v146_v20 = vld [vmem:[%s4297_s0 + $0x400] sm:$0xff] }
  0x4c   :  { %828 = vmatmul.mubr.bf16.gmra.mxu1 %v594_v61  ;;  %925 = vmatmul.mubr.bf16.gmra.mxu0 %v596_v62  ;;  %v308_v61 = vpack.c.bf16 %v151_v51, %v150_v50  ;;  %v116_v62 = vld [vmem:[%s4297_s0 + $0x310] sm:$0xff]  ;;  %v147_v21 = vld [vmem:[%s4297_s0 + $0x408] sm:$0xff]  ;;  %v209_v23 = vld [vmem:[%s4297_s0 + $0x5f8] sm:$0xff]  ;;  %v290_v32 = vpack.c.bf16 %v115_v15, %v114_v14  ;;  %v636_v36 = vpack.c.bf16 %v482_v17, %v468_v16 }
  0x4d   :  { %835 = vmatprep.mubr.bf16.mxu1 %v609_v2  ;;  %932 = vmatprep.mubr.bf16.mxu0 %v611_v3  ;;  %v148_v2 = vld [vmem:[%s4297_s0 + $0x410] sm:$0xff]  ;;  %v149_v3 = vld [vmem:[%s4297_s0 + $0x418] sm:$0xff]  ;;  %v470_v26 = vld [vmem:[%s4298_s1 + $0x3a0] sm:$0xff] }
  0x4e   :  { %2019 = vmatpush3.bf16.msra.mxu1 %v295_v4  ;;  %2083 = vmatpush3.bf16.msra.mxu0 %v311_v5  ;;  %v130_v4 = vld [vmem:[%s4297_s0 + $0x380] sm:$0xff]  ;;  %v622_v5 = vpack.c.bf16 %v454_v45, %v440_v44  ;;  %v208_v22 = vld [vmem:[%s4297_s0 + $0x5f0] sm:$0xff]  ;;  %v499_v30 = vld [vmem:[%s4298_s1 + $0x488] sm:$0xff] }
  0x4f   :  { %2020 = vmatprep.subr.bf16.mxu1 %v302_v12  ;;  %2084 = vmatprep.subr.bf16.mxu0 %v318_v13  ;;  %v291_v12 = vpack.c.bf16 %v117_v63, %v116_v62  ;;  %v307_v13 = vpack.c.bf16 %v149_v3, %v148_v2  ;;  %v298_v18 = vpack.c.bf16 %v131_v7, %v130_v4  ;;  %v484_v27 = vld [vmem:[%s4298_s1 + $0x410] sm:$0xff]  ;;  %v513_v31 = vld [vmem:[%s4298_s1 + $0x4f8] sm:$0xff]  ;;  %v498_v42 = vld [vmem:[%s4298_s1 + $0x480] sm:$0xff] }
  0x50   :  { %v638_v37 = vpack.c.bf16 %v484_v27, %v470_v26  ;;  %v512_v43 = vld [vmem:[%s4298_s1 + $0x4f0] sm:$0xff]  ;;  %v525_v44 = vld [vmem:[%s4298_s1 + $0x558] sm:$0xff]  ;;  %v539_v45 = vld [vmem:[%s4298_s1 + $0x5c8] sm:$0xff] }
  0x51   :  { %v527_v46 = vld [vmem:[%s4298_s1 + $0x568] sm:$0xff]  ;;  %v541_v47 = vld [vmem:[%s4298_s1 + $0x5d8] sm:$0xff]  ;;  %v665_v50 = vpack.c.bf16 %v539_v45, %v525_v44  ;;  %v524_v52 = vld [vmem:[%s4298_s1 + $0x550] sm:$0xff] }
  0x52   :  { %2021 = vmatpush3.bf16.msra.mxu1 %v294_v24  ;;  %2085 = vmatpush3.bf16.msra.mxu0 %v310_v25  ;;  %v240_v24 = vld [vmem:[%s4297_s0 + $0x6f0] sm:$0xff]  ;;  %v241_v25 = vld [vmem:[%s4297_s0 + $0x6f8] sm:$0xff]  ;;  %v667_v51 = vpack.c.bf16 %v541_v47, %v527_v46  ;;  %v538_v53 = vld [vmem:[%s4298_s1 + $0x5c0] sm:$0xff] }
  0x53   :  { %2022 = vmatprep.subr.bf16.mxu1 %v301_v28  ;;  %2086 = vmatprep.subr.bf16.mxu0 %v317_v29  ;;  %v497_v28 = vld [vmem:[%s4298_s1 + $0x478] sm:$0xff]  ;;  %v511_v29 = vld [vmem:[%s4298_s1 + $0x4e8] sm:$0xff]  ;;  %v353_v35 = vpack.c.bf16 %v241_v25, %v240_v24  ;;  %v526_v54 = vld [vmem:[%s4298_s1 + $0x560] sm:$0xff] }
  0x54   :  { %836 = vmatmul.mubr.bf16.gmra.mxu1 %v608_v33  ;;  %933 = vmatmul.mubr.bf16.gmra.mxu0 %v610_v34  ;;  %v306_v33 = vpack.c.bf16 %v147_v21, %v146_v20  ;;  %v337_v34 = vpack.c.bf16 %v209_v23, %v208_v22  ;;  %v540_v55 = vld [vmem:[%s4298_s1 + $0x5d0] sm:$0xff]  ;;  %v553_v56 = vld [vmem:[%s4298_s1 + $0x638] sm:$0xff]  ;;  %v567_v57 = vld [vmem:[%s4298_s1 + $0x6a8] sm:$0xff] }
  0x55   :  { %843 = vmatprep.mubr.bf16.mxu1 %v623_v38  ;;  %940 = vmatprep.mubr.bf16.mxu0 %v625_v39  ;;  %v651_v38 = vpack.c.bf16 %v511_v29, %v497_v28  ;;  %v653_v39 = vpack.c.bf16 %v513_v31, %v499_v30  ;;  %v555_v58 = vld [vmem:[%s4298_s1 + $0x648] sm:$0xff]  ;;  %v569_v59 = vld [vmem:[%s4298_s1 + $0x6b8] sm:$0xff]  ;;  %v679_v62 = vpack.c.bf16 %v567_v57, %v553_v56  ;;  %v554_v2 = vld [vmem:[%s4298_s1 + $0x640] sm:$0xff] }
  0x56   :  { %2023 = vmatpush3.bf16.msra.mxu1 %v293_v40  ;;  %2087 = vmatpush3.bf16.msra.mxu0 %v309_v41  ;;  %v496_v40 = vld [vmem:[%s4298_s1 + $0x470] sm:$0xff]  ;;  %v510_v41 = vld [vmem:[%s4298_s1 + $0x4e0] sm:$0xff]  ;;  %v681_v63 = vpack.c.bf16 %v569_v59, %v555_v58  ;;  %v361_v4 = vld [vmem:[%s4298_s1 + $0x38] sm:$0xff] }
  0x57   :  { %2024 = vmatprep.subr.bf16.mxu1 %v300_v48  ;;  %2088 = vmatprep.subr.bf16.mxu0 %v316_v49  ;;  %v650_v48 = vpack.c.bf16 %v510_v41, %v496_v40  ;;  %v652_v49 = vpack.c.bf16 %v512_v43, %v498_v42  ;;  %v568_v3 = vld [vmem:[%s4298_s1 + $0x6b0] sm:$0xff]  ;;  %v377_v7 = vld [vmem:[%s4298_s1 + $0xb8] sm:$0xff]  ;;  %v362_v14 = vld [vmem:[%s4298_s1 + $0x40] sm:$0xff] }
  0x58   :  { %v680_v9 = vpack.c.bf16 %v568_v3, %v554_v2  ;;  %v376_v15 = vld [vmem:[%s4298_s1 + $0xb0] sm:$0xff]  ;;  %v193_v17 = vld [vmem:[%s4297_s0 + $0x578] sm:$0xff]  ;;  %v403_v21 = vld [vmem:[%s4298_s1 + $0x188] sm:$0xff] }
  0x59   :  { %v192_v16 = vld [vmem:[%s4297_s0 + $0x570] sm:$0xff]  ;;  %v389_v20 = vld [vmem:[%s4298_s1 + $0x118] sm:$0xff]  ;;  %v391_v22 = vld [vmem:[%s4298_s1 + $0x128] sm:$0xff]  ;;  %v586_v26 = vpack.c.bf16 %v376_v15, %v362_v14 }
  0x5a   :  { %2025 = vmatpush3.bf16.msra.mxu1 %v292_v60  ;;  %2089 = vmatpush3.bf16.msra.mxu0 %v308_v61  ;;  %v664_v60 = vpack.c.bf16 %v538_v53, %v524_v52  ;;  %v666_v61 = vpack.c.bf16 %v540_v55, %v526_v54  ;;  %v405_v23 = vld [vmem:[%s4298_s1 + $0x198] sm:$0xff]  ;;  %v206_v24 = vld [vmem:[%s4297_s0 + $0x5e0] sm:$0xff]  ;;  %v207_v27 = vld [vmem:[%s4297_s0 + $0x5e8] sm:$0xff]  ;;  %v329_v30 = vpack.c.bf16 %v193_v17, %v192_v16 }
  0x5b   :  { %2026 = vmatprep.subr.bf16.mxu1 %v299_v0  ;;  %2090 = vmatprep.subr.bf16.mxu0 %v315_v1  ;;  %v552_v0 = vld [vmem:[%s4298_s1 + $0x630] sm:$0xff]  ;;  %v566_v1 = vld [vmem:[%s4298_s1 + $0x6a0] sm:$0xff]  ;;  %v239_v29 = vld [vmem:[%s4297_s0 + $0x6e8] sm:$0xff]  ;;  %v336_v40 = vpack.c.bf16 %v207_v27, %v206_v24 }
  0x5c   :  { %844 = vmatmul.mubr.bf16.gmra.mxu1 %v622_v5  ;;  %941 = vmatmul.mubr.bf16.gmra.mxu0 %v624_v6  ;;  %v375_v5 = vld [vmem:[%s4298_s1 + $0xa8] sm:$0xff]  ;;  %v678_v8 = vpack.c.bf16 %v566_v1, %v552_v0  ;;  %v238_v28 = vld [vmem:[%s4297_s0 + $0x6e0] sm:$0xff]  ;;  %v205_v42 = vld [vmem:[%s4297_s0 + $0x5d8] sm:$0xff] }
  0x5d   :  { %851 = vmatprep.mubr.bf16.mxu1 %v637_v10  ;;  %948 = vmatprep.mubr.bf16.mxu0 %v639_v11  ;;  %v363_v6 = vld [vmem:[%s4298_s1 + $0x48] sm:$0xff]  ;;  %v585_v10 = vpack.c.bf16 %v375_v5, %v361_v4  ;;  %v352_v41 = vpack.c.bf16 %v239_v29, %v238_v28  ;;  %v236_v43 = vld [vmem:[%s4297_s0 + $0x6d0] sm:$0xff]  ;;  %v237_v44 = vld [vmem:[%s4297_s0 + $0x6d8] sm:$0xff] }
  0x5e   :  { %2027 = vmatpush3.bf16.msra.mxu1 %v291_v12  ;;  %2091 = vmatpush3.bf16.msra.mxu0 %v307_v13  ;;  %v587_v11 = vpack.c.bf16 %v377_v7, %v363_v6  ;;  %v360_v12 = vld [vmem:[%s4298_s1 + $0x30] sm:$0xff]  ;;  %v374_v13 = vld [vmem:[%s4298_s1 + $0xa0] sm:$0xff]  ;;  %v419_v52 = vld [vmem:[%s4298_s1 + $0x208] sm:$0xff]  ;;  %v351_v57 = vpack.c.bf16 %v237_v44, %v236_v43 }
  0x5f   :  { %2028 = vmatprep.subr.bf16.mxu1 %v298_v18  ;;  %2092 = vmatprep.subr.bf16.mxu0 %v314_v19  ;;  %v224_v18 = vld [vmem:[%s4297_s0 + $0x670] sm:$0xff]  ;;  %v225_v19 = vld [vmem:[%s4297_s0 + $0x678] sm:$0xff]  ;;  %v584_v25 = vpack.c.bf16 %v374_v13, %v360_v12  ;;  %v402_v45 = vld [vmem:[%s4298_s1 + $0x180] sm:$0xff] }
  0x60   :  { %v345_v31 = vpack.c.bf16 %v225_v19, %v224_v18  ;;  %v390_v46 = vld [vmem:[%s4298_s1 + $0x120] sm:$0xff]  ;;  %v404_v47 = vld [vmem:[%s4298_s1 + $0x190] sm:$0xff]  ;;  %v433_v53 = vld [vmem:[%s4298_s1 + $0x278] sm:$0xff] }
  0x61   :  { %v188_v55 = vld [vmem:[%s4297_s0 + $0x550] sm:$0xff]  ;;  %v189_v56 = vld [vmem:[%s4297_s0 + $0x558] sm:$0xff]  ;;  %v234_v0 = vld [vmem:[%s4297_s0 + $0x6c0] sm:$0xff]  ;;  %v615_v3 = vpack.c.bf16 %v433_v53, %v419_v52 }
  0x62   :  { %2029 = vmatpush3.bf16.msra.mxu1 %v290_v32  ;;  %2093 = vmatpush3.bf16.msra.mxu0 %v306_v33  ;;  %v190_v32 = vld [vmem:[%s4297_s0 + $0x560] sm:$0xff]  ;;  %v191_v33 = vld [vmem:[%s4297_s0 + $0x568] sm:$0xff]  ;;  %v220_v58 = vld [vmem:[%s4297_s0 + $0x650] sm:$0xff]  ;;  %v327_v4 = vpack.c.bf16 %v189_v56, %v188_v55 }
  0x63   :  { %2142 = vmatprep.subr.bf16.mxu1 %v337_v34  ;;  %2206 = vmatprep.subr.bf16.mxu0 %v353_v35  ;;  %v599_v34 = vpack.c.bf16 %v403_v21, %v389_v20  ;;  %v601_v35 = vpack.c.bf16 %v405_v23, %v391_v22  ;;  %v221_v59 = vld [vmem:[%s4297_s0 + $0x658] sm:$0xff]  ;;  %v235_v1 = vld [vmem:[%s4297_s0 + $0x6c8] sm:$0xff]  ;;  %v186_v6 = vld [vmem:[%s4297_s0 + $0x540] sm:$0xff] }
  0x64   :  { %852 = vmatmul.mubr.bf16.gmra.mxu1 %v636_v36  ;;  %949 = vmatmul.mubr.bf16.gmra.mxu0 %v638_v37  ;;  %v222_v36 = vld [vmem:[%s4297_s0 + $0x660] sm:$0xff]  ;;  %v223_v37 = vld [vmem:[%s4297_s0 + $0x668] sm:$0xff]  ;;  %v343_v5 = vpack.c.bf16 %v221_v59, %v220_v58  ;;  %v350_v13 = vpack.c.bf16 %v235_v1, %v234_v0  ;;  %v200_v16 = vld [vmem:[%s4297_s0 + $0x5b0] sm:$0xff] }
  0x65   :  { %859 = vmatprep.mubr.bf16.mxu1 %v651_v38  ;;  %956 = vmatprep.mubr.bf16.mxu0 %v653_v39  ;;  %v204_v38 = vld [vmem:[%s4297_s0 + $0x5d0] sm:$0xff]  ;;  %v187_v7 = vld [vmem:[%s4297_s0 + $0x548] sm:$0xff]  ;;  %v218_v14 = vld [vmem:[%s4297_s0 + $0x640] sm:$0xff] }
  0x66   :  { %v388_v39 = vld [vmem:[%s4298_s1 + $0x110] sm:$0xff]  ;;  %v335_v54 = vpack.c.bf16 %v205_v42, %v204_v38  ;;  %v219_v15 = vld [vmem:[%s4297_s0 + $0x648] sm:$0xff]  ;;  %v201_v17 = vld [vmem:[%s4297_s0 + $0x5b8] sm:$0xff]  ;;  %v326_v24 = vpack.c.bf16 %v187_v7, %v186_v6 }
  0x67   :  { %v232_v18 = vld [vmem:[%s4297_s0 + $0x6b0] sm:$0xff]  ;;  %v233_v19 = vld [vmem:[%s4297_s0 + $0x6b8] sm:$0xff]  ;;  %v459_v21 = vld [vmem:[%s4298_s1 + $0x348] sm:$0xff]  ;;  %v333_v28 = vpack.c.bf16 %v201_v17, %v200_v16 }
  0x68   :  { %v445_v20 = vld [vmem:[%s4298_s1 + $0x2d8] sm:$0xff]  ;;  %v447_v22 = vld [vmem:[%s4298_s1 + $0x2e8] sm:$0xff]  ;;  %v349_v29 = vpack.c.bf16 %v233_v19, %v232_v18  ;;  %v182_v42 = vld [vmem:[%s4297_s0 + $0x520] sm:$0xff] }
  0x69   :  { %v461_v23 = vld [vmem:[%s4298_s1 + $0x358] sm:$0xff]  ;;  %v627_v38 = vpack.c.bf16 %v459_v21, %v445_v20  ;;  %v183_v43 = vld [vmem:[%s4297_s0 + $0x528] sm:$0xff]  ;;  %v444_v44 = vld [vmem:[%s4298_s1 + $0x2d0] sm:$0xff] }
  0x6a   :  { %v185_v27 = vld [vmem:[%s4297_s0 + $0x538] sm:$0xff]  ;;  %v196_v52 = vld [vmem:[%s4297_s0 + $0x590] sm:$0xff]  ;;  %v475_v58 = vld [vmem:[%s4298_s1 + $0x3c8] sm:$0xff] }
  0x6b   :  { %v197_v53 = vld [vmem:[%s4297_s0 + $0x598] sm:$0xff]  ;;  %v195_v7 = vld [vmem:[%s4297_s0 + $0x588] sm:$0xff]  ;;  %v210_v18 = vld [vmem:[%s4297_s0 + $0x600] sm:$0xff] }
  0x6c   :  { %860 = vmatmul.mubr.bf16.gmra.mxu1 %v650_v48  ;;  %957 = vmatmul.mubr.bf16.gmra.mxu0 %v652_v49  ;;  %v328_v48 = vpack.c.bf16 %v191_v33, %v190_v32  ;;  %v344_v49 = vpack.c.bf16 %v223_v37, %v222_v36  ;;  %v198_v32 = vld [vmem:[%s4297_s0 + $0x5a0] sm:$0xff]  ;;  %v231_v37 = vld [vmem:[%s4297_s0 + $0x6a8] sm:$0xff]  ;;  %v229_v55 = vld [vmem:[%s4297_s0 + $0x698] sm:$0xff]  ;;  %v331_v0 = vpack.c.bf16 %v197_v53, %v196_v52 }
  0x6d   :  { %867 = vmatprep.mubr.bf16.mxu1 %v665_v50  ;;  %964 = vmatprep.mubr.bf16.mxu0 %v667_v51  ;;  %v417_v50 = vld [vmem:[%s4298_s1 + $0x1f8] sm:$0xff]  ;;  %v431_v51 = vld [vmem:[%s4298_s1 + $0x268] sm:$0xff]  ;;  %v230_v36 = vld [vmem:[%s4297_s0 + $0x6a0] sm:$0xff] }
  0x6e   :  { %v613_v2 = vpack.c.bf16 %v431_v51, %v417_v50  ;;  %v214_v50 = vld [vmem:[%s4297_s0 + $0x620] sm:$0xff]  ;;  %v215_v51 = vld [vmem:[%s4297_s0 + $0x628] sm:$0xff]  ;;  %v473_v56 = vld [vmem:[%s4298_s1 + $0x3b8] sm:$0xff] }
  0x6f   :  { %v489_v59 = vld [vmem:[%s4298_s1 + $0x438] sm:$0xff]  ;;  %v179_v16 = vld [vmem:[%s4297_s0 + $0x508] sm:$0xff]  ;;  %v472_v20 = vld [vmem:[%s4298_s1 + $0x3b0] sm:$0xff] }
  0x70   :  { %v211_v19 = vld [vmem:[%s4297_s0 + $0x608] sm:$0xff]  ;;  %v486_v21 = vld [vmem:[%s4298_s1 + $0x420] sm:$0xff]  ;;  %v573_v53 = vld [vmem:[%s4298_s1 + $0x6d8] sm:$0xff] }
  0x71   :  { %v559_v52 = vld [vmem:[%s4298_s1 + $0x668] sm:$0xff] }
  0x74   :  { %868 = vmatmul.mubr.bf16.gmra.mxu1 %v664_v60  ;;  %965 = vmatmul.mubr.bf16.gmra.mxu0 %v666_v61  ;;  %v202_v60 = vld [vmem:[%s4297_s0 + $0x5c0] sm:$0xff]  ;;  %v598_v61 = vpack.c.bf16 %v402_v45, %v388_v39  ;;  %v629_v39 = vpack.c.bf16 %v461_v23, %v447_v22  ;;  %v488_v23 = vld [vmem:[%s4298_s1 + $0x430] sm:$0xff] }
  0x75   :  { %875 = vmatprep.mubr.bf16.mxu1 %v679_v62  ;;  %972 = vmatprep.mubr.bf16.mxu0 %v681_v63  ;;  %v600_v62 = vpack.c.bf16 %v404_v47, %v390_v46  ;;  %v203_v63 = vld [vmem:[%s4297_s0 + $0x5c8] sm:$0xff]  ;;  %v458_v45 = vld [vmem:[%s4298_s1 + $0x340] sm:$0xff]  ;;  %v460_v47 = vld [vmem:[%s4298_s1 + $0x350] sm:$0xff] }
  0x76   :  { %v334_v12 = vpack.c.bf16 %v203_v63, %v202_v60  ;;  %v446_v46 = vld [vmem:[%s4298_s1 + $0x2e0] sm:$0xff]  ;;  %v324_v60 = vpack.c.bf16 %v183_v43, %v182_v42  ;;  %v181_v63 = vld [vmem:[%s4297_s0 + $0x518] sm:$0xff] }
  0x77   :  { %v628_v6 = vpack.c.bf16 %v460_v47, %v446_v46  ;;  %v474_v22 = vld [vmem:[%s4298_s1 + $0x3c0] sm:$0xff]  ;;  %v528_v46 = vld [vmem:[%s4298_s1 + $0x570] sm:$0xff] }
  0x78   :  { %v542_v47 = vld [vmem:[%s4298_s1 + $0x5e0] sm:$0xff] }
  0x7c   :  { %876 = vmatmul.mubr.bf16.gmra.mxu1 %v678_v8  ;;  %973 = vmatmul.mubr.bf16.gmra.mxu0 %v680_v9  ;;  %v416_v8 = vld [vmem:[%s4298_s1 + $0x1f0] sm:$0xff]  ;;  %v430_v9 = vld [vmem:[%s4298_s1 + $0x260] sm:$0xff] }
  0x7d   :  { %1013 = vmatprep.mubr.bf16.mxu1 %v585_v10  ;;  %1110 = vmatprep.mubr.bf16.mxu0 %v587_v11  ;;  %v418_v10 = vld [vmem:[%s4298_s1 + $0x200] sm:$0xff]  ;;  %v432_v11 = vld [vmem:[%s4298_s1 + $0x270] sm:$0xff]  ;;  %v612_v33 = vpack.c.bf16 %v430_v9, %v416_v8  ;;  %v227_v9 = vld [vmem:[%s4297_s0 + $0x688] sm:$0xff] }
  0x7e   :  { %v226_v8 = vld [vmem:[%s4297_s0 + $0x680] sm:$0xff] }
  0x7f   :  { %v346_v17 = vpack.c.bf16 %v227_v9, %v226_v8  ;;  %v366_v8 = vld [vmem:[%s4298_s1 + $0x60] sm:$0xff]  ;;  %v380_v9 = vld [vmem:[%s4298_s1 + $0xd0] sm:$0xff] }
  0x84   :  { %1014 = vmatmul.mubr.bf16.vlgmr.msra.gmra.mxu1 %v584_v25  ;;  %1111 = vmatmul.mubr.bf16.vlgmr.msra.gmra.mxu0 %v586_v26  ;;  %v342_v25 = vpack.c.bf16 %v219_v15, %v218_v14  ;;  %v184_v26 = vld [vmem:[%s4297_s0 + $0x530] sm:$0xff]  ;;  %v178_v14 = vld [vmem:[%s4297_s0 + $0x500] sm:$0xff] }
  0x85   :  { %2143 = vmatpush3.bf16.msra.mxu1 %v329_v30  ;;  %2207 = vmatpush3.bf16.msra.mxu0 %v345_v31  ;;  %v216_v30 = vld [vmem:[%s4297_s0 + $0x630] sm:$0xff]  ;;  %v217_v31 = vld [vmem:[%s4297_s0 + $0x638] sm:$0xff] }
  0x86   :  { %1021 = vmatprep.mubr.bf16.mxu1 %v599_v34  ;;  %1118 = vmatprep.mubr.bf16.mxu0 %v601_v35  ;;  %v614_v34 = vpack.c.bf16 %v432_v11, %v418_v10  ;;  %v199_v35 = vld [vmem:[%s4297_s0 + $0x5a8] sm:$0xff]  ;;  %v643_v11 = vpack.c.bf16 %v489_v59, %v475_v58  ;;  %v556_v58 = vld [vmem:[%s4298_s1 + $0x650] sm:$0xff]  ;;  %v570_v59 = vld [vmem:[%s4298_s1 + $0x6c0] sm:$0xff] }
  0x87   :  { %2144 = vmatprep.subr.bf16.mxu1 %v336_v40  ;;  %2208 = vmatprep.subr.bf16.mxu0 %v352_v41  ;;  %v325_v40 = vpack.c.bf16 %v185_v27, %v184_v26  ;;  %v341_v41 = vpack.c.bf16 %v217_v31, %v216_v30  ;;  %v503_v26 = vld [vmem:[%s4298_s1 + $0x4a8] sm:$0xff]  ;;  %v517_v27 = vld [vmem:[%s4298_s1 + $0x518] sm:$0xff]  ;;  %v640_v30 = vpack.c.bf16 %v486_v21, %v472_v20  ;;  %v394_v20 = vld [vmem:[%s4298_s1 + $0x140] sm:$0xff] }
  0x88   :  { %v642_v31 = vpack.c.bf16 %v488_v23, %v474_v22  ;;  %v408_v21 = vld [vmem:[%s4298_s1 + $0x1b0] sm:$0xff]  ;;  %v421_v22 = vld [vmem:[%s4298_s1 + $0x218] sm:$0xff]  ;;  %v435_v23 = vld [vmem:[%s4298_s1 + $0x288] sm:$0xff] }
  0x89   :  { %2145 = vmatpush3.bf16.msra.mxu1 %v328_v48  ;;  %2209 = vmatpush3.bf16.msra.mxu0 %v344_v49  ;;  %v332_v48 = vpack.c.bf16 %v199_v35, %v198_v32  ;;  %v348_v49 = vpack.c.bf16 %v231_v37, %v230_v36  ;;  %v514_v35 = vld [vmem:[%s4298_s1 + $0x500] sm:$0xff]  ;;  %v516_v37 = vld [vmem:[%s4298_s1 + $0x510] sm:$0xff] }
  0x8a   :  { %2146 = vmatprep.subr.bf16.mxu1 %v335_v54  ;;  %2210 = vmatprep.subr.bf16.mxu0 %v351_v57  ;;  %v228_v54 = vld [vmem:[%s4297_s0 + $0x690] sm:$0xff]  ;;  %v487_v57 = vld [vmem:[%s4298_s1 + $0x428] sm:$0xff]  ;;  %v502_v36 = vld [vmem:[%s4298_s1 + $0x4a0] sm:$0xff] }
  0x8b   :  { %v347_v1 = vpack.c.bf16 %v229_v55, %v228_v54  ;;  %v641_v10 = vpack.c.bf16 %v487_v57, %v473_v56  ;;  %v656_v43 = vpack.c.bf16 %v516_v37, %v502_v36  ;;  %v668_v54 = vpack.c.bf16 %v542_v47, %v528_v46  ;;  %v451_v36 = vld [vmem:[%s4298_s1 + $0x308] sm:$0xff]  ;;  %v465_v37 = vld [vmem:[%s4298_s1 + $0x378] sm:$0xff] }
  0x8c   :  { %1022 = vmatmul.mubr.bf16.gmra.mxu1 %v598_v61  ;;  %1119 = vmatmul.mubr.bf16.gmra.mxu0 %v600_v62  ;;  %v340_v61 = vpack.c.bf16 %v215_v51, %v214_v50  ;;  %v180_v62 = vld [vmem:[%s4297_s0 + $0x510] sm:$0xff]  ;;  %v557_v50 = vld [vmem:[%s4298_s1 + $0x658] sm:$0xff]  ;;  %v571_v51 = vld [vmem:[%s4298_s1 + $0x6c8] sm:$0xff]  ;;  %v685_v57 = vpack.c.bf16 %v573_v53, %v559_v52 }
  0x8d   :  { %1029 = vmatprep.mubr.bf16.mxu1 %v613_v2  ;;  %1126 = vmatprep.mubr.bf16.mxu0 %v615_v3  ;;  %v212_v2 = vld [vmem:[%s4297_s0 + $0x610] sm:$0xff]  ;;  %v213_v3 = vld [vmem:[%s4297_s0 + $0x618] sm:$0xff]  ;;  %v683_v56 = vpack.c.bf16 %v571_v51, %v557_v50  ;;  %v491_v47 = vld [vmem:[%s4298_s1 + $0x448] sm:$0xff] }
  0x8e   :  { %2147 = vmatpush3.bf16.msra.mxu1 %v327_v4  ;;  %2211 = vmatpush3.bf16.msra.mxu0 %v343_v5  ;;  %v194_v4 = vld [vmem:[%s4297_s0 + $0x580] sm:$0xff]  ;;  %v626_v5 = vpack.c.bf16 %v458_v45, %v444_v44  ;;  %v477_v46 = vld [vmem:[%s4298_s1 + $0x3d8] sm:$0xff] }
  0x8f   :  { %2148 = vmatprep.subr.bf16.mxu1 %v334_v12  ;;  %2212 = vmatprep.subr.bf16.mxu0 %v350_v13  ;;  %v323_v12 = vpack.c.bf16 %v181_v63, %v180_v62  ;;  %v339_v13 = vpack.c.bf16 %v213_v3, %v212_v2  ;;  %v330_v15 = vpack.c.bf16 %v195_v7, %v194_v4  ;;  %v365_v62 = vld [vmem:[%s4298_s1 + $0x58] sm:$0xff]  ;;  %v379_v63 = vld [vmem:[%s4298_s1 + $0xc8] sm:$0xff]  ;;  %v378_v7 = vld [vmem:[%s4298_s1 + $0xc0] sm:$0xff] }
  0x90   :  { %v682_v2 = vpack.c.bf16 %v570_v59, %v556_v58  ;;  %v589_v4 = vpack.c.bf16 %v379_v63, %v365_v62  ;;  %v645_v52 = vpack.c.bf16 %v491_v47, %v477_v46  ;;  %v505_v58 = vld [vmem:[%s4298_s1 + $0x4b8] sm:$0xff]  ;;  %v519_v59 = vld [vmem:[%s4298_s1 + $0x528] sm:$0xff] }
  0x92   :  { %2149 = vmatpush3.bf16.msra.mxu1 %v326_v24  ;;  %2213 = vmatpush3.bf16.msra.mxu0 %v342_v25  ;;  %v501_v24 = vld [vmem:[%s4298_s1 + $0x498] sm:$0xff]  ;;  %v515_v25 = vld [vmem:[%s4298_s1 + $0x508] sm:$0xff] }
  0x93   :  { %2150 = vmatprep.subr.bf16.mxu1 %v333_v28  ;;  %2214 = vmatprep.subr.bf16.mxu0 %v349_v29  ;;  %v322_v28 = vpack.c.bf16 %v179_v16, %v178_v14  ;;  %v338_v29 = vpack.c.bf16 %v211_v19, %v210_v18  ;;  %v655_v32 = vpack.c.bf16 %v515_v25, %v501_v24  ;;  %v392_v18 = vld [vmem:[%s4298_s1 + $0x130] sm:$0xff]  ;;  %v406_v19 = vld [vmem:[%s4298_s1 + $0x1a0] sm:$0xff]  ;;  %v423_v24 = vld [vmem:[%s4298_s1 + $0x228] sm:$0xff] }
  0x94   :  { %1030 = vmatmul.mubr.bf16.gmra.mxu1 %v612_v33  ;;  %1127 = vmatmul.mubr.bf16.gmra.mxu0 %v614_v34  ;;  %v657_v33 = vpack.c.bf16 %v517_v27, %v503_v26  ;;  %v500_v34 = vld [vmem:[%s4298_s1 + $0x490] sm:$0xff]  ;;  %v437_v25 = vld [vmem:[%s4298_s1 + $0x298] sm:$0xff]  ;;  %v602_v26 = vpack.c.bf16 %v406_v19, %v392_v18  ;;  %v604_v27 = vpack.c.bf16 %v408_v21, %v394_v20 }
  0x95   :  { %1037 = vmatprep.mubr.bf16.mxu1 %v627_v38  ;;  %1134 = vmatprep.mubr.bf16.mxu0 %v629_v39  ;;  %v529_v38 = vld [vmem:[%s4298_s1 + $0x578] sm:$0xff]  ;;  %v543_v39 = vld [vmem:[%s4298_s1 + $0x5e8] sm:$0xff]  ;;  %v654_v42 = vpack.c.bf16 %v514_v35, %v500_v34 }
  0x96   :  { %2151 = vmatpush3.bf16.msra.mxu1 %v325_v40  ;;  %2215 = vmatpush3.bf16.msra.mxu0 %v341_v41  ;;  %v531_v40 = vld [vmem:[%s4298_s1 + $0x588] sm:$0xff]  ;;  %v545_v41 = vld [vmem:[%s4298_s1 + $0x5f8] sm:$0xff]  ;;  %v669_v44 = vpack.c.bf16 %v543_v39, %v529_v38 }
  0x97   :  { %2152 = vmatprep.subr.bf16.mxu1 %v332_v48  ;;  %2216 = vmatprep.subr.bf16.mxu0 %v348_v49  ;;  %v671_v45 = vpack.c.bf16 %v545_v41, %v531_v40  ;;  %v530_v48 = vld [vmem:[%s4298_s1 + $0x580] sm:$0xff]  ;;  %v544_v49 = vld [vmem:[%s4298_s1 + $0x5f0] sm:$0xff]  ;;  %v449_v34 = vld [vmem:[%s4298_s1 + $0x2f8] sm:$0xff]  ;;  %v633_v41 = vpack.c.bf16 %v465_v37, %v451_v36 }
  0x98   :  { %v670_v55 = vpack.c.bf16 %v544_v49, %v530_v48  ;;  %v463_v35 = vld [vmem:[%s4298_s1 + $0x368] sm:$0xff]  ;;  %v493_v49 = vld [vmem:[%s4298_s1 + $0x458] sm:$0xff] }
  0x99   :  { %v631_v40 = vpack.c.bf16 %v463_v35, %v449_v34  ;;  %v479_v48 = vld [vmem:[%s4298_s1 + $0x3e8] sm:$0xff]  ;;  %v577_v37 = vld [vmem:[%s4298_s1 + $0x6f8] sm:$0xff] }
  0x9a   :  { %2153 = vmatpush3.bf16.msra.mxu1 %v324_v60  ;;  %2217 = vmatpush3.bf16.msra.mxu0 %v340_v61  ;;  %v558_v60 = vld [vmem:[%s4298_s1 + $0x660] sm:$0xff]  ;;  %v572_v61 = vld [vmem:[%s4298_s1 + $0x6d0] sm:$0xff]  ;;  %v647_v53 = vpack.c.bf16 %v493_v49, %v479_v48  ;;  %v575_v35 = vld [vmem:[%s4298_s1 + $0x6e8] sm:$0xff] }
  0x9b   :  { %2154 = vmatprep.subr.bf16.mxu1 %v331_v0  ;;  %2218 = vmatprep.subr.bf16.mxu0 %v347_v1  ;;  %v367_v0 = vld [vmem:[%s4298_s1 + $0x68] sm:$0xff]  ;;  %v381_v1 = vld [vmem:[%s4298_s1 + $0xd8] sm:$0xff]  ;;  %v684_v3 = vpack.c.bf16 %v572_v61, %v558_v60 }
  0x9c   :  { %1038 = vmatmul.mubr.bf16.gmra.mxu1 %v626_v5  ;;  %1135 = vmatmul.mubr.bf16.gmra.mxu0 %v628_v6  ;;  %v591_v5 = vpack.c.bf16 %v381_v1, %v367_v0  ;;  %v364_v6 = vld [vmem:[%s4298_s1 + $0x50] sm:$0xff]  ;;  %v507_v60 = vld [vmem:[%s4298_s1 + $0x4c8] sm:$0xff]  ;;  %v521_v61 = vld [vmem:[%s4298_s1 + $0x538] sm:$0xff]  ;;  %v659_v0 = vpack.c.bf16 %v519_v59, %v505_v58 }
  0x9d   :  { %1045 = vmatprep.mubr.bf16.mxu1 %v641_v10  ;;  %1142 = vmatprep.mubr.bf16.mxu0 %v643_v11  ;;  %v393_v10 = vld [vmem:[%s4298_s1 + $0x138] sm:$0xff]  ;;  %v407_v11 = vld [vmem:[%s4298_s1 + $0x1a8] sm:$0xff]  ;;  %v588_v14 = vpack.c.bf16 %v378_v7, %v364_v6  ;;  %v661_v1 = vpack.c.bf16 %v521_v61, %v507_v60  ;;  %v506_v6 = vld [vmem:[%s4298_s1 + $0x4c0] sm:$0xff] }
  0x9e   :  { %2155 = vmatpush3.bf16.msra.mxu1 %v323_v12  ;;  %2219 = vmatpush3.bf16.msra.mxu0 %v339_v13  ;;  %v395_v12 = vld [vmem:[%s4298_s1 + $0x148] sm:$0xff]  ;;  %v409_v13 = vld [vmem:[%s4298_s1 + $0x1b8] sm:$0xff]  ;;  %v603_v16 = vpack.c.bf16 %v407_v11, %v393_v10  ;;  %v520_v7 = vld [vmem:[%s4298_s1 + $0x530] sm:$0xff] }
  0x9f   :  { %2156 = vmatprep.subr.bf16.mxu1 %v330_v15  ;;  %2220 = vmatprep.subr.bf16.mxu0 %v346_v17  ;;  %v590_v15 = vpack.c.bf16 %v380_v9, %v366_v8  ;;  %v605_v17 = vpack.c.bf16 %v409_v13, %v395_v12  ;;  %v533_v8 = vld [vmem:[%s4298_s1 + $0x598] sm:$0xff]  ;;  %v547_v11 = vld [vmem:[%s4298_s1 + $0x608] sm:$0xff]  ;;  %v660_v19 = vpack.c.bf16 %v520_v7, %v506_v6 }
  0xa0   :  { %v535_v12 = vld [vmem:[%s4298_s1 + $0x5a8] sm:$0xff]  ;;  %v549_v13 = vld [vmem:[%s4298_s1 + $0x618] sm:$0xff]  ;;  %v673_v20 = vpack.c.bf16 %v547_v11, %v533_v8 }
  0xa1   :  { %v675_v21 = vpack.c.bf16 %v549_v13, %v535_v12  ;;  %v563_v36 = vld [vmem:[%s4298_s1 + $0x688] sm:$0xff] }
  0xa2   :  { %2157 = vmatpush3.bf16.msra.mxu1 %v322_v28  ;;  %2221 = vmatpush3.bf16.msra.mxu0 %v338_v29  ;;  %v617_v28 = vpack.c.bf16 %v435_v23, %v421_v22  ;;  %v619_v29 = vpack.c.bf16 %v437_v25, %v423_v24 }
  0xa4   :  { %1046 = vmatmul.mubr.bf16.gmra.mxu1 %v640_v30  ;;  %1143 = vmatmul.mubr.bf16.gmra.mxu0 %v642_v31  ;;  %v420_v30 = vld [vmem:[%s4298_s1 + $0x210] sm:$0xff]  ;;  %v434_v31 = vld [vmem:[%s4298_s1 + $0x280] sm:$0xff] }
  0xa5   :  { %1053 = vmatprep.mubr.bf16.mxu1 %v655_v32  ;;  %1150 = vmatprep.mubr.bf16.mxu0 %v657_v33  ;;  %v422_v32 = vld [vmem:[%s4298_s1 + $0x220] sm:$0xff]  ;;  %v436_v33 = vld [vmem:[%s4298_s1 + $0x290] sm:$0xff]  ;;  %v616_v38 = vpack.c.bf16 %v434_v31, %v420_v30 }
  0xa6   :  { %v618_v39 = vpack.c.bf16 %v436_v33, %v422_v32  ;;  %v534_v30 = vld [vmem:[%s4298_s1 + $0x5a0] sm:$0xff]  ;;  %v548_v31 = vld [vmem:[%s4298_s1 + $0x610] sm:$0xff]  ;;  %v561_v32 = vld [vmem:[%s4298_s1 + $0x678] sm:$0xff] }
  0xac   :  { %1054 = vmatmul.mubr.bf16.gmra.mxu1 %v654_v42  ;;  %1151 = vmatmul.mubr.bf16.gmra.mxu0 %v656_v43  ;;  %v448_v42 = vld [vmem:[%s4298_s1 + $0x2f0] sm:$0xff]  ;;  %v462_v43 = vld [vmem:[%s4298_s1 + $0x360] sm:$0xff] }
  0xad   :  { %1061 = vmatprep.mubr.bf16.mxu1 %v669_v44  ;;  %1158 = vmatprep.mubr.bf16.mxu0 %v671_v45  ;;  %v450_v44 = vld [vmem:[%s4298_s1 + $0x300] sm:$0xff]  ;;  %v464_v45 = vld [vmem:[%s4298_s1 + $0x370] sm:$0xff]  ;;  %v630_v50 = vpack.c.bf16 %v462_v43, %v448_v42  ;;  %v674_v43 = vpack.c.bf16 %v548_v31, %v534_v30 }
  0xae   :  { %v632_v51 = vpack.c.bf16 %v464_v45, %v450_v44  ;;  %v687_v44 = vpack.c.bf16 %v575_v35, %v561_v32  ;;  %v689_v45 = vpack.c.bf16 %v577_v37, %v563_v36 }
  0xb4   :  { %1062 = vmatmul.mubr.bf16.gmra.mxu1 %v668_v54  ;;  %1159 = vmatmul.mubr.bf16.gmra.mxu0 %v670_v55  ;;  %v476_v54 = vld [vmem:[%s4298_s1 + $0x3d0] sm:$0xff]  ;;  %v490_v55 = vld [vmem:[%s4298_s1 + $0x440] sm:$0xff] }
  0xb5   :  { %1069 = vmatprep.mubr.bf16.mxu1 %v683_v56  ;;  %1166 = vmatprep.mubr.bf16.mxu0 %v685_v57  ;;  %v478_v56 = vld [vmem:[%s4298_s1 + $0x3e0] sm:$0xff]  ;;  %v492_v57 = vld [vmem:[%s4298_s1 + $0x450] sm:$0xff]  ;;  %v644_v62 = vpack.c.bf16 %v490_v55, %v476_v54 }
  0xb6   :  { %v646_v63 = vpack.c.bf16 %v492_v57, %v478_v56  ;;  %v562_v54 = vld [vmem:[%s4298_s1 + $0x680] sm:$0xff]  ;;  %v576_v55 = vld [vmem:[%s4298_s1 + $0x6f0] sm:$0xff] }
  0xbc   :  { %1070 = vmatmul.mubr.bf16.gmra.mxu1 %v682_v2  ;;  %1167 = vmatmul.mubr.bf16.gmra.mxu0 %v684_v3 }
  0xbd   :  { %1207 = vmatprep.mubr.bf16.mxu1 %v589_v4  ;;  %1304 = vmatprep.mubr.bf16.mxu0 %v591_v5  ;;  %v504_v4 = vld [vmem:[%s4298_s1 + $0x4b0] sm:$0xff]  ;;  %v518_v5 = vld [vmem:[%s4298_s1 + $0x520] sm:$0xff] }
  0xbe   :  { %v658_v18 = vpack.c.bf16 %v518_v5, %v504_v4 }
  0xc4   :  { %1208 = vmatmul.mubr.bf16.vlgmr.msra.gmra.mxu1 %v588_v14  ;;  %1305 = vmatmul.mubr.bf16.vlgmr.msra.gmra.mxu0 %v590_v15 }
  0xc5   :  { %1215 = vmatprep.mubr.bf16.mxu1 %v603_v16  ;;  %1312 = vmatprep.mubr.bf16.mxu0 %v605_v17 }
  0xcc   :  { %1216 = vmatmul.mubr.bf16.gmra.mxu1 %v602_v26  ;;  %1313 = vmatmul.mubr.bf16.gmra.mxu0 %v604_v27 }
  0xcd   :  { %1223 = vmatprep.mubr.bf16.mxu1 %v617_v28  ;;  %1320 = vmatprep.mubr.bf16.mxu0 %v619_v29  ;;  %v532_v28 = vld [vmem:[%s4298_s1 + $0x590] sm:$0xff]  ;;  %v546_v29 = vld [vmem:[%s4298_s1 + $0x600] sm:$0xff] }
  0xce   :  { %v672_v42 = vpack.c.bf16 %v546_v29, %v532_v28 }
  0xd4   :  { %1224 = vmatmul.mubr.bf16.gmra.mxu1 %v616_v38  ;;  %1321 = vmatmul.mubr.bf16.gmra.mxu0 %v618_v39 }
  0xd5   :  { %1231 = vmatprep.mubr.bf16.mxu1 %v631_v40  ;;  %1328 = vmatprep.mubr.bf16.mxu0 %v633_v41 }
  0xdc   :  { %1232 = vmatmul.mubr.bf16.gmra.mxu1 %v630_v50  ;;  %1329 = vmatmul.mubr.bf16.gmra.mxu0 %v632_v51 }
  0xdd   :  { %1239 = vmatprep.mubr.bf16.mxu1 %v645_v52  ;;  %1336 = vmatprep.mubr.bf16.mxu0 %v647_v53  ;;  %v560_v52 = vld [vmem:[%s4298_s1 + $0x670] sm:$0xff]  ;;  %v574_v53 = vld [vmem:[%s4298_s1 + $0x6e0] sm:$0xff] }
  0xe4   :  { %v1838_v2 = vpop.f32.mrf.mxu0  ;;  %v1862_v3 = vpop.f32.mrf.mxu1  ;;  %1240 = vmatmul.mubr.bf16.gmra.mxu1 %v644_v62  ;;  %1337 = vmatmul.mubr.bf16.gmra.mxu0 %v646_v63  ;;  %v686_v62 = vpack.c.bf16 %v574_v53, %v560_v52  ;;  %v688_v63 = vpack.c.bf16 %v576_v55, %v562_v54 }
  0xe5   :  { %1247 = vmatprep.mubr.bf16.mxu1 %v659_v0  ;;  %1344 = vmatprep.mubr.bf16.mxu0 %v661_v1 }
  0xe6   :  { %v1839_v9 = vpop.f32.mrf.mxu0  ;;  %v1863_v10 = vpop.f32.mrf.mxu1 }
  0xe7   :  { %v3655_v14 = vadd.f32 %v1839_v9, %v1838_v2  ;;  %v3657_v15 = vadd.f32 %v1863_v10, %v1862_v3 }
  0xe8   :  { %v1841_v16 = vpop.f32.mrf.mxu0  ;;  %v1865_v17 = vpop.f32.mrf.mxu1 }
  0xea   :  { %v1842_v22 = vpop.f32.mrf.mxu0  ;;  %v1866_v23 = vpop.f32.mrf.mxu1 }
  0xeb   :  { %v3659_v24 = vadd.f32 %v1842_v22, %v1841_v16  ;;  %v3661_v25 = vadd.f32 %v1866_v23, %v1865_v17 }
  0xec   :  { %v1844_v26 = vpop.f32.mrf.mxu0  ;;  %v1868_v27 = vpop.f32.mrf.mxu1  ;;  %1248 = vmatmul.mubr.bf16.gmra.mxu1 %v658_v18  ;;  %1345 = vmatmul.mubr.bf16.gmra.mxu0 %v660_v19 }
  0xed   :  { %1255 = vmatprep.mubr.bf16.mxu1 %v673_v20  ;;  %1352 = vmatprep.mubr.bf16.mxu0 %v675_v21 }
  0xee   :  { %v1845_v33 = vpop.f32.mrf.mxu0  ;;  %v1869_v34 = vpop.f32.mrf.mxu1 }
  0xef   :  { %v3687_v38 = vadd.f32 %v1845_v33, %v1844_v26  ;;  %v3689_v39 = vadd.f32 %v1869_v34, %v1868_v27 }
  0xf0   :  { %v1847_v40 = vpop.f32.mrf.mxu0  ;;  %v1871_v41 = vpop.f32.mrf.mxu1 }
  0xf2   :  { %v1848_v46 = vpop.f32.mrf.mxu0  ;;  %v1872_v47 = vpop.f32.mrf.mxu1 }
  0xf3   :  { %v3691_v48 = vadd.f32 %v1848_v46, %v1847_v40  ;;  %v3693_v49 = vadd.f32 %v1872_v47, %v1871_v41 }
  0xf4   :  { %v1850_v50 = vpop.f32.mrf.mxu0  ;;  %v1874_v51 = vpop.f32.mrf.mxu1  ;;  %1256 = vmatmul.mubr.bf16.gmra.mxu1 %v672_v42  ;;  %1353 = vmatmul.mubr.bf16.gmra.mxu0 %v674_v43 }
  0xf5   :  { %1263 = vmatprep.mubr.bf16.mxu1 %v687_v44  ;;  %1360 = vmatprep.mubr.bf16.mxu0 %v689_v45 }
  0xf6   :  { %v1851_v56 = vpop.f32.mrf.mxu0  ;;  %v1875_v57 = vpop.f32.mrf.mxu1 }
  0xf7   :  { %v3707_v58 = vadd.f32 %v1851_v56, %v1850_v50  ;;  %v3709_v59 = vadd.f32 %v1875_v57, %v1874_v51 }
  0xf8   :  { %v1853_v60 = vpop.f32.mrf.mxu0  ;;  %v1877_v61 = vpop.f32.mrf.mxu1 }
  0xfa   :  { %v1854_v0 = vpop.f32.mrf.mxu0  ;;  %v1878_v1 = vpop.f32.mrf.mxu1 }
  0xfb   :  { %v3711_v2 = vadd.f32 %v1854_v0, %v1853_v60  ;;  %v3713_v3 = vadd.f32 %v1878_v1, %v1877_v61 }
  0xfc   :  { %v1856_v4 = vpop.f32.mrf.mxu0  ;;  %v1880_v5 = vpop.f32.mrf.mxu1  ;;  %1264 = vmatmul.mubr.bf16.gmra.mxu1 %v686_v62  ;;  %1361 = vmatmul.mubr.bf16.gmra.mxu0 %v688_v63 }
  0xfe   :  { %v1857_v6 = vpop.f32.mrf.mxu0  ;;  %v1881_v7 = vpop.f32.mrf.mxu1 }
  0xff   :  { %v3715_v8 = vadd.f32 %v1857_v6, %v1856_v4  ;;  %v3717_v9 = vadd.f32 %v1881_v7, %v1880_v5 }
 0x100   :  { %v1859_v10 = vpop.f32.mrf.mxu0  ;;  %v1883_v11 = vpop.f32.mrf.mxu1 }
 0x102   :  { %v1860_v12 = vpop.f32.mrf.mxu0  ;;  %v1884_v13 = vpop.f32.mrf.mxu1 }
 0x103   :  { %v3719_v16 = vadd.f32 %v1860_v12, %v1859_v10  ;;  %v3721_v17 = vadd.f32 %v1884_v13, %v1883_v11 }
 0x104   :  { %v1902_v18 = vpop.f32.mrf.mxu1  ;;  %v1966_v19 = vpop.f32.mrf.mxu0 }
 0x106   :  { %v1903_v20 = vpop.f32.mrf.mxu1  ;;  %v1967_v21 = vpop.f32.mrf.mxu0 }
 0x107   :  { %v1904_v22 = vadd.f32 %v1903_v20, %v1902_v18  ;;  %v1968_v23 = vadd.f32 %v1967_v21, %v1966_v19 }
 0x108   :  { %v1905_v26 = vpop.f32.mrf.mxu1  ;;  %v1969_v27 = vpop.f32.mrf.mxu0 }
 0x109   :  { %v822_v28 = vadd.f32 %v1904_v22, %v3655_v14 }
 0x10a   :  { %v1906_v29 = vpop.f32.mrf.mxu1  ;;  %v1970_v30 = vpop.f32.mrf.mxu0 }
 0x10b   :  { %v3724_v31 = vadd.f32 %v1968_v23, %v822_v28  ;;  %v1907_v32 = vadd.f32 %v1906_v29, %v1905_v26  ;;  %v1971_v33 = vadd.f32 %v1970_v30, %v1969_v27 }
 0x10c   :  { %v1908_v34 = vpop.f32.mrf.mxu1  ;;  %v1972_v35 = vpop.f32.mrf.mxu0 }
 0x10d   :  { %v825_v36 = vadd.f32 %v1907_v32, %v3659_v24 }
 0x10e   :  { %v1909_v37 = vpop.f32.mrf.mxu1  ;;  %v1973_v40 = vpop.f32.mrf.mxu0 }
 0x10f   :  { %v3727_v41 = vadd.f32 %v1971_v33, %v825_v36  ;;  %v1910_v42 = vadd.f32 %v1909_v37, %v1908_v34  ;;  %v1974_v43 = vadd.f32 %v1973_v40, %v1972_v35 }
 0x110   :  { %v1911_v44 = vpop.f32.mrf.mxu1  ;;  %v1975_v45 = vpop.f32.mrf.mxu0 }
 0x111   :  { %v830_v14 = vadd.f32 %v1910_v42, %v3687_v38 }
 0x112   :  { %v1912_v46 = vpop.f32.mrf.mxu1  ;;  %v1976_v47 = vpop.f32.mrf.mxu0 }
 0x113   :  { %v3730_v50 = vadd.f32 %v1974_v43, %v830_v14  ;;  %v1913_v51 = vadd.f32 %v1912_v46, %v1911_v44  ;;  %v1977_v52 = vadd.f32 %v1976_v47, %v1975_v45 }
 0x114   :  { %v1914_v53 = vpop.f32.mrf.mxu1  ;;  %v1978_v54 = vpop.f32.mrf.mxu0 }
 0x115   :  { %v833_v24 = vadd.f32 %v1913_v51, %v3691_v48 }
 0x116   :  { %v1915_v55 = vpop.f32.mrf.mxu1  ;;  %v1979_v56 = vpop.f32.mrf.mxu0 }
 0x117   :  { %v3733_v57 = vadd.f32 %v1977_v52, %v833_v24  ;;  %v1916_v60 = vadd.f32 %v1915_v55, %v1914_v53  ;;  %v1980_v61 = vadd.f32 %v1979_v56, %v1978_v54 }
 0x118   :  { %v1917_v62 = vpop.f32.mrf.mxu1  ;;  %v1981_v63 = vpop.f32.mrf.mxu0 }
 0x119   :  { %v838_v38 = vadd.f32 %v1916_v60, %v3707_v58 }
 0x11a   :  { %v1918_v0 = vpop.f32.mrf.mxu1  ;;  %v1982_v1 = vpop.f32.mrf.mxu0 }
 0x11b   :  { %v3736_v4 = vadd.f32 %v1980_v61, %v838_v38  ;;  %v1919_v5 = vadd.f32 %v1918_v0, %v1917_v62  ;;  %v1983_v6 = vadd.f32 %v1982_v1, %v1981_v63 }
 0x11c   :  { %v1920_v7 = vpop.f32.mrf.mxu1  ;;  %v1984_v10 = vpop.f32.mrf.mxu0 }
 0x11d   :  { %v841_v48 = vadd.f32 %v1919_v5, %v3711_v2 }
 0x11e   :  { %v1921_v11 = vpop.f32.mrf.mxu1  ;;  %v1985_v12 = vpop.f32.mrf.mxu0 }
 0x11f   :  { %v3739_v13 = vadd.f32 %v1983_v6, %v841_v48  ;;  %v1922_v18 = vadd.f32 %v1921_v11, %v1920_v7  ;;  %v1986_v19 = vadd.f32 %v1985_v12, %v1984_v10 }
 0x120   :  { %v1923_v20 = vpop.f32.mrf.mxu1  ;;  %v1987_v21 = vpop.f32.mrf.mxu0 }
 0x121   :  { %v846_v58 = vadd.f32 %v1922_v18, %v3715_v8 }
 0x122   :  { %v1924_v22 = vpop.f32.mrf.mxu1  ;;  %v1988_v23 = vpop.f32.mrf.mxu0 }
 0x123   :  { %v3742_v26 = vadd.f32 %v1986_v19, %v846_v58  ;;  %v1925_v27 = vadd.f32 %v1924_v22, %v1923_v20  ;;  %v1989_v28 = vadd.f32 %v1988_v23, %v1987_v21 }
 0x124   :  { %v1926_v29 = vpop.f32.mrf.mxu1  ;;  %v1990_v30 = vpop.f32.mrf.mxu0 }
 0x125   :  { %v849_v2 = vadd.f32 %v1925_v27, %v3719_v16 }
 0x126   :  { %v1927_v32 = vpop.f32.mrf.mxu1  ;;  %v1991_v33 = vpop.f32.mrf.mxu0 }
 0x127   :  { %v3745_v34 = vadd.f32 %v1989_v28, %v849_v2  ;;  %v1928_v35 = vadd.f32 %v1927_v32, %v1926_v29  ;;  %v1992_v36 = vadd.f32 %v1991_v33, %v1990_v30 }
 0x128   :  { %v1929_v37 = vpop.f32.mrf.mxu1  ;;  %v1993_v40 = vpop.f32.mrf.mxu0 }
 0x129   :  { %v854_v8 = vadd.f32 %v1928_v35, %v3657_v15 }
 0x12a   :  { %v1930_v42 = vpop.f32.mrf.mxu1  ;;  %v1994_v43 = vpop.f32.mrf.mxu0 }
 0x12b   :  { %v3748_v44 = vadd.f32 %v1992_v36, %v854_v8  ;;  %v1931_v45 = vadd.f32 %v1930_v42, %v1929_v37  ;;  %v1995_v14 = vadd.f32 %v1994_v43, %v1993_v40 }
 0x12c   :  { %v1932_v46 = vpop.f32.mrf.mxu1  ;;  %v1996_v47 = vpop.f32.mrf.mxu0 }
 0x12d   :  { %v857_v16 = vadd.f32 %v1931_v45, %v3661_v25 }
 0x12e   :  { %v1933_v51 = vpop.f32.mrf.mxu1  ;;  %v1997_v52 = vpop.f32.mrf.mxu0 }
 0x12f   :  { %v3751_v53 = vadd.f32 %v1995_v14, %v857_v16  ;;  %v1934_v54 = vadd.f32 %v1933_v51, %v1932_v46  ;;  %v1998_v24 = vadd.f32 %v1997_v52, %v1996_v47 }
 0x130   :  { %v1935_v55 = vpop.f32.mrf.mxu1  ;;  %v1999_v56 = vpop.f32.mrf.mxu0 }
 0x131   :  { %v862_v15 = vadd.f32 %v1934_v54, %v3689_v39 }
 0x132   :  { %v1936_v60 = vpop.f32.mrf.mxu1  ;;  %v2000_v61 = vpop.f32.mrf.mxu0 }
 0x133   :  { %v3754_v62 = vadd.f32 %v1998_v24, %v862_v15  ;;  %v1937_v63 = vadd.f32 %v1936_v60, %v1935_v55  ;;  %v2001_v38 = vadd.f32 %v2000_v61, %v1999_v56 }
 0x134   :  { %v1938_v0 = vpop.f32.mrf.mxu1  ;;  %v2002_v1 = vpop.f32.mrf.mxu0 }
 0x135   :  { %4302 = vst [vmem:[#allocation2_spill] sm:$0xff] %v3754_v62  ;;  %v865_v25 = vadd.f32 %v1937_v63, %v3693_v49 }
 0x136   :  { %v1939_v5 = vpop.f32.mrf.mxu1  ;;  %v2003_v6 = vpop.f32.mrf.mxu0 }
 0x137   :  { %v3757_v7 = vadd.f32 %v2001_v38, %v865_v25  ;;  %v1940_v10 = vadd.f32 %v1939_v5, %v1938_v0  ;;  %v2004_v48 = vadd.f32 %v2003_v6, %v2002_v1 }
 0x138   :  { %v1941_v11 = vpop.f32.mrf.mxu1  ;;  %v2005_v12 = vpop.f32.mrf.mxu0 }
 0x139   :  { %4303 = vst [vmem:[#allocation3_spill] sm:$0xff] %v3757_v7  ;;  %v870_v39 = vadd.f32 %v1940_v10, %v3709_v59 }
 0x13a   :  { %v1942_v18 = vpop.f32.mrf.mxu1  ;;  %v2006_v19 = vpop.f32.mrf.mxu0 }
 0x13b   :  { %v3760_v20 = vadd.f32 %v2004_v48, %v870_v39  ;;  %v1943_v21 = vadd.f32 %v1942_v18, %v1941_v11  ;;  %v2007_v58 = vadd.f32 %v2006_v19, %v2005_v12 }
 0x13c   :  { %v1944_v22 = vpop.f32.mrf.mxu1  ;;  %v2008_v23 = vpop.f32.mrf.mxu0 }
 0x13d   :  { %4304 = vst [vmem:[#allocation4_spill] sm:$0xff] %v3760_v20  ;;  %v873_v49 = vadd.f32 %v1943_v21, %v3713_v3 }
 0x13e   :  { %v1945_v27 = vpop.f32.mrf.mxu1  ;;  %v2009_v28 = vpop.f32.mrf.mxu0 }
 0x13f   :  { %v3763_v29 = vadd.f32 %v2007_v58, %v873_v49  ;;  %v1946_v30 = vadd.f32 %v1945_v27, %v1944_v22  ;;  %v2010_v2 = vadd.f32 %v2009_v28, %v2008_v23 }
 0x140   :  { %v1947_v32 = vpop.f32.mrf.mxu1  ;;  %v2011_v33 = vpop.f32.mrf.mxu0 }
 0x141   :  { %4305 = vst [vmem:[#allocation5_spill] sm:$0xff] %v3763_v29  ;;  %v878_v59 = vadd.f32 %v1946_v30, %v3717_v9 }
 0x142   :  { %v1948_v35 = vpop.f32.mrf.mxu1  ;;  %v2012_v36 = vpop.f32.mrf.mxu0 }
 0x143   :  { %v3766_v37 = vadd.f32 %v2010_v2, %v878_v59  ;;  %v1949_v40 = vadd.f32 %v1948_v35, %v1947_v32  ;;  %v2013_v8 = vadd.f32 %v2012_v36, %v2011_v33 }
 0x144   :  { %v2030_v42 = vpop.f32.mrf.mxu1  ;;  %v3768_v43 = vpop.f32.mrf.mxu0 }
 0x145   :  { %4306 = vst [vmem:[#allocation6_spill] sm:$0xff] %v3766_v37  ;;  %v881_v3 = vadd.f32 %v1949_v40, %v3721_v17 }
 0x146   :  { %v2031_v45 = vpop.f32.mrf.mxu1  ;;  %v3771_v14 = vpop.f32.mrf.mxu0 }
 0x147   :  { %v3773_v46 = vadd.f32 %v2013_v8, %v881_v3 }
 0x148   :  { %v2033_v47 = vpop.f32.mrf.mxu1  ;;  %v3775_v16 = vpop.f32.mrf.mxu0 }
 0x149   :  { %4307 = vst [vmem:[#allocation7_spill] sm:$0xff] %v3773_v46 }
 0x14a   :  { %v2034_v9 = vpop.f32.mrf.mxu1  ;;  %v3777_v51 = vpop.f32.mrf.mxu0 }
 0x14c   :  { %v2036_v52 = vpop.f32.mrf.mxu1  ;;  %v3779_v54 = vpop.f32.mrf.mxu0 }
 0x14e   :  { %v2037_v24 = vpop.f32.mrf.mxu1  ;;  %v3781_v55 = vpop.f32.mrf.mxu0 }
 0x150   :  { %v3783_v56 = vpop.f32.mrf.mxu1  ;;  %v3785_v17 = vpop.f32.mrf.mxu0 }
 0x152   :  { %v3787_v15 = vpop.f32.mrf.mxu1  ;;  %v3789_v60 = vpop.f32.mrf.mxu0 }
 0x154   :  { %v3791_v61 = vpop.f32.mrf.mxu1  ;;  %v3793_v63 = vpop.f32.mrf.mxu0 }
 0x156   :  { %v3795_v38 = vpop.f32.mrf.mxu1  ;;  %v3797_v0 = vpop.f32.mrf.mxu0 }
 0x158   :  { %v3799_v1 = vpop.f32.mrf.mxu1  ;;  %v3801_v25 = vpop.f32.mrf.mxu0 }
 0x15a   :  { %v3803_v5 = vpop.f32.mrf.mxu1  ;;  %v3805_v6 = vpop.f32.mrf.mxu0 }
 0x15c   :  { %v3807_v10 = vpop.f32.mrf.mxu1  ;;  %v3809_v48 = vpop.f32.mrf.mxu0 }
 0x15e   :  { %v3811_v11 = vpop.f32.mrf.mxu1  ;;  %v3813_v12 = vpop.f32.mrf.mxu0 }
 0x160   :  { %v3815_v39 = vpop.f32.mrf.mxu1  ;;  %v3817_v18 = vpop.f32.mrf.mxu0 }
 0x162   :  { %v3819_v19 = vpop.f32.mrf.mxu1  ;;  %v3821_v21 = vpop.f32.mrf.mxu0 }
 0x164   :  { %v3823_v58 = vpop.f32.mrf.mxu1  ;;  %v3825_v22 = vpop.f32.mrf.mxu0 }
 0x166   :  { %v3827_v23 = vpop.f32.mrf.mxu1  ;;  %v3829_v49 = vpop.f32.mrf.mxu0 }
 0x168   :  { %v3831_v27 = vpop.f32.mrf.mxu1  ;;  %v3833_v28 = vpop.f32.mrf.mxu0 }
 0x169   :  { %4308 = vst [vmem:[#allocation8_spill] sm:$0xff] %v3833_v28 }
 0x16a   :  { %v3835_v30 = vpop.f32.mrf.mxu1  ;;  %v3837_v2 = vpop.f32.mrf.mxu0 }
 0x16b   :  { %4309 = vst [vmem:[#allocation9_spill] sm:$0xff] %v3837_v2 }
 0x16c   :  { %v3839_v32 = vpop.f32.mrf.mxu1  ;;  %v3841_v33 = vpop.f32.mrf.mxu0 }
 0x16d   :  { %4310 = vst [vmem:[#allocation10_spill] sm:$0xff] %v3841_v33 }
 0x16e   :  { %v3843_v59 = vpop.f32.mrf.mxu1  ;;  %v3845_v35 = vpop.f32.mrf.mxu0 }
 0x16f   :  { %4311 = vst [vmem:[#allocation11_spill] sm:$0xff] %v3845_v35 }
 0x170   :  { %v3847_v36 = vpop.f32.mrf.mxu1  ;;  %v3849_v40 = vpop.f32.mrf.mxu0 }
 0x171   :  { %4312 = vst [vmem:[#allocation12_spill] sm:$0xff] %v3847_v36  ;;  %4313 = vst [vmem:[#allocation13_spill] sm:$0xff] %v3849_v40 }
 0x172   :  { %v3851_v8 = vpop.f32.mrf.mxu1  ;;  %v3853_v3 = vpop.f32.mrf.mxu0 }
 0x173   :  { %4314 = vst [vmem:[#allocation14_spill] sm:$0xff] %v3851_v8  ;;  %4315 = vst [vmem:[#allocation15_spill] sm:$0xff] %v3853_v3 }
 0x174   :  { %v3855_v46 = vpop.f32.mrf.mxu1  ;;  %v3857_v37 = vpop.f32.mrf.mxu0 }
 0x175   :  { %4316 = vst [vmem:[#allocation16_spill] sm:$0xff] %v3855_v46  ;;  %4317 = vst [vmem:[#allocation17_spill] sm:$0xff] %v3857_v37  ;;  %v2032_v37 = vadd.f32 %v2031_v45, %v2030_v42 }
 0x176   :  { %v3859_v29 = vpop.f32.mrf.mxu1  ;;  %v3861_v20 = vpop.f32.mrf.mxu0 }
 0x177   :  { %4318 = vst [vmem:[#allocation18_spill] sm:$0xff] %v3859_v29  ;;  %4319 = vst [vmem:[#allocation19_spill] sm:$0xff] %v3861_v20 }
 0x178   :  { %v3863_v7 = vpop.f32.mrf.mxu1  ;;  %v3865_v33 = vpop.f32.mrf.mxu0 }
 0x179   :  { %4320 = vst [vmem:[#allocation20_spill] sm:$0xff] %v3863_v7  ;;  %4321 = vst [vmem:[#allocation21_spill] sm:$0xff] %v3865_v33 }
 0x17a   :  { %v3867_v35 = vpop.f32.mrf.mxu1  ;;  %v3869_v62 = vpop.f32.mrf.mxu0 }
 0x17b   :  { %4322 = vst [vmem:[#allocation22_spill] sm:$0xff] %v3867_v35  ;;  %4323 = vst [vmem:[#allocation23_spill] sm:$0xff] %v3869_v62  ;;  %v1016_v35 = vadd.f32 %v2032_v37, %v3724_v31  ;;  %v2035_v62 = vadd.f32 %v2034_v9, %v2033_v47 }
 0x17c   :  { %v3871_v40 = vpop.f32.mrf.mxu1  ;;  %v3873_v8 = vpop.f32.mrf.mxu0 }
 0x17d   :  { %4324 = vst [vmem:[#allocation24_spill] sm:$0xff] %v3871_v40  ;;  %4325 = vst [vmem:[#allocation25_spill] sm:$0xff] %v3873_v8  ;;  %v2096_v8 = vadd.f32 %v3771_v14, %v3768_v43  ;;  %v1019_v45 = vadd.f32 %v2035_v62, %v3727_v41  ;;  %v2041_v14 = vadd.f32 %v3787_v15, %v3783_v56 }
 0x17e   :  { %v3875_v3 = vpop.f32.mrf.mxu1  ;;  %v3877_v46 = vpop.f32.mrf.mxu0  ;;  %v2102_v41 = vadd.f32 %v3781_v55, %v3779_v54  ;;  %v2105_v15 = vadd.f32 %v3789_v60, %v3785_v17  ;;  %v2108_v17 = vadd.f32 %v3797_v0, %v3793_v63  ;;  %v2111_v63 = vadd.f32 %v3805_v6, %v3801_v25 }
 0x17f   :  { %4326 = vst [vmem:[#allocation26_spill] sm:$0xff] %v3875_v3  ;;  %4327 = vst [vmem:[#allocation27_spill] sm:$0xff] %v3877_v46  ;;  %v2038_v3 = vadd.f32 %v2037_v24, %v2036_v52  ;;  %v1113_v42 = vadd.f32 %v2096_v8, %v1016_v35  ;;  %v2047_v8 = vadd.f32 %v3803_v5, %v3799_v1 }
 0x180   :  { %v3879_v29 = vpop.f32.mrf.mxu1  ;;  %v3881_v20 = vpop.f32.mrf.mxu0 }
 0x181   :  { %4328 = vst [vmem:[#allocation28_spill] sm:$0xff] %v3879_v29  ;;  %4329 = vst [vmem:[#allocation29_spill] sm:$0xff] %v3881_v20  ;;  %v1024_v37 = vadd.f32 %v2038_v3, %v3730_v50  ;;  %v1035_v1 = vadd.f32 %v2047_v8, %v3739_v13 }
 0x182   :  { %v3883_v7 = vpop.f32.mrf.mxu1  ;;  %v3885_v33 = vpop.f32.mrf.mxu0 }
 0x183   :  { %4330 = vst [vmem:[#allocation30_spill] sm:$0xff] %v3883_v7  ;;  %4331 = vst [vmem:[#allocation31_spill] sm:$0xff] %v3885_v33  ;;  %v2099_v33 = vadd.f32 %v3777_v51, %v3775_v16 }
 0x184   :  { %v2158_v36 = vpop.f32.mrf.mxu1  ;;  %v2222_v40 = vpop.f32.mrf.mxu0 }
 0x185   :  { %v1116_v43 = vadd.f32 %v2099_v33, %v1019_v45  ;;  %v1027_v33 = vadd.f32 %v2041_v14, %v3733_v57 }
 0x186   :  { %v2159_v2 = vpop.f32.mrf.mxu1  ;;  %v2223_v46 = vpop.f32.mrf.mxu0 }
 0x187   :  { %v2160_v29 = vadd.f32 %v2159_v2, %v2158_v36  ;;  %v2224_v31 = vadd.f32 %v2223_v46, %v2222_v40  ;;  %v1121_v46 = vadd.f32 %v2102_v41, %v1024_v37 }
 0x188   :  { %v2161_v20 = vpop.f32.mrf.mxu1  ;;  %v2225_v28 = vpop.f32.mrf.mxu0 }
 0x189   :  { %v1210_v7 = vadd.f32 %v2160_v29, %v1113_v42 }
 0x18a   :  { %v2162_v47 = vpop.f32.mrf.mxu1  ;;  %v2226_v9 = vpop.f32.mrf.mxu0 }
 0x18b   :  { %v2163_v52 = vadd.f32 %v2162_v47, %v2161_v20  ;;  %v3896_v24 = vadd.f32 %v2224_v31, %v1210_v7  ;;  %v2227_v29 = vadd.f32 %v2226_v9, %v2225_v28  ;;  %v2044_v7 = vadd.f32 %v3795_v38, %v3791_v61 }
 0x18c   :  { %v2164_v62 = vpop.f32.mrf.mxu1  ;;  %v2228_v2 = vpop.f32.mrf.mxu0  ;;  %v1124_v61 = vadd.f32 %v2105_v15, %v1027_v33  ;;  %v2114_v33 = vadd.f32 %v3813_v12, %v3809_v48  ;;  %v2117_v48 = vadd.f32 %v3821_v21, %v3817_v18  ;;  %v2120_v18 = vadd.f32 %v3829_v49, %v3825_v22 }
 0x18d   :  { %v1213_v16 = vadd.f32 %v2163_v52, %v1116_v43  ;;  %v1370_v50 = vsel %vm1369_vm0, %v3896_v24, 0.0  ;;  %v1032_v38 = vadd.f32 %v2044_v7, %v3736_v4  ;;  %v2050_v4 = vadd.f32 %v3811_v11, %v3807_v10 }
 0x18e   :  { %v2165_v51 = vpop.f32.mrf.mxu1  ;;  %v2229_v35 = vpop.f32.mrf.mxu0  ;;  %1371 = vadd.xlane.f32.xlu0 %v1370_v50  ;;  %v2053_v10 = vadd.f32 %v3819_v19, %v3815_v39 }
 0x18f   :  { %v2166_v20 = vadd.f32 %v2165_v51, %v2164_v62  ;;  %v3905_v56 = vadd.f32 %v2227_v29, %v1213_v16  ;;  %v2230_v36 = vadd.f32 %v2229_v35, %v2228_v2  ;;  %v1129_v14 = vadd.f32 %v2108_v17, %v1032_v38 }
 0x190   :  { %v2167_v54 = vpop.f32.mrf.mxu1  ;;  %v2231_v55 = vpop.f32.mrf.mxu0  ;;  %v1132_v29 = vadd.f32 %v2111_v63, %v1035_v1  ;;  %v1040_v51 = vadd.f32 %v2050_v4, %v3742_v26  ;;  %v1043_v19 = vadd.f32 %v2053_v10, %v3745_v34  ;;  %v2059_v34 = vadd.f32 %v3835_v30, %v3831_v27  ;;  %v4333_v4 = vld [vmem:[#allocation9_spill] sm:$0xff] }
 0x191   :  { %v1218_v28 = vadd.f32 %v2166_v20, %v1121_v46  ;;  %v1373_v40 = vsel %vm1369_vm0, %v3905_v56, 0.0  ;;  %v2062_v27 = vadd.f32 %v3843_v59, %v3839_v32  ;;  %v4336_v59 = vld [vmem:[#allocation2_spill] sm:$0xff] }
 0x192   :  { %v2168_v57 = vpop.f32.mrf.mxu1  ;;  %v2232_v3 = vpop.f32.mrf.mxu0  ;;  %1374 = vadd.xlane.f32.xlu0 %v1373_v40  ;;  %v1137_v39 = vadd.f32 %v2114_v33, %v1040_v51  ;;  %v1140_v38 = vadd.f32 %v2117_v48, %v1043_v19 }
 0x193   :  { %v2169_v42 = vadd.f32 %v2168_v57, %v2167_v54  ;;  %v3914_v45 = vadd.f32 %v2230_v36, %v1218_v28  ;;  %v2233_v47 = vadd.f32 %v2232_v3, %v2231_v55  ;;  %v2056_v55 = vadd.f32 %v3827_v23, %v3823_v58 }
 0x194   :  { %v2170_v31 = vpop.f32.mrf.mxu1  ;;  %v2234_v37 = vpop.f32.mrf.mxu0 }
 0x195   :  { %v1221_v60 = vadd.f32 %v2169_v42, %v1124_v61  ;;  %v1376_v9 = vsel %vm1369_vm0, %v3914_v45, 0.0  ;;  %v1048_v58 = vadd.f32 %v2056_v55, %v3748_v44  ;;  %v4339_v55 = vld [vmem:[#allocation3_spill] sm:$0xff] }
 0x196   :  { %v2171_v5 = vpop.f32.mrf.mxu1  ;;  %v2235_v43 = vpop.f32.mrf.mxu0  ;;  %1377 = vadd.xlane.f32.xlu1 %v1376_v9 }
 0x197   :  { %v2172_v52 = vadd.f32 %v2171_v5, %v2170_v31  ;;  %v3923_v41 = vadd.f32 %v2233_v47, %v1221_v60  ;;  %v2236_v16 = vadd.f32 %v2235_v43, %v2234_v37  ;;  %v1145_v47 = vadd.f32 %v2120_v18, %v1048_v58 }
 0x198   :  { %v2173_v0 = vpop.f32.mrf.mxu1  ;;  %v2237_v62 = vpop.f32.mrf.mxu0  ;;  %v1051_v5 = vadd.f32 %v2059_v34, %v3751_v53 }
 0x199   :  { %v1226_v2 = vadd.f32 %v2172_v52, %v1129_v14  ;;  %v1379_v13 = vsel %vm1369_vm0, %v3923_v41, 0.0  ;;  %v4332_v14 = vld [vmem:[#allocation8_spill] sm:$0xff] }
 0x19a   :  { %v2174_v50 = vpop.f32.mrf.mxu1  ;;  %v2238_v46 = vpop.f32.mrf.mxu0  ;;  %1380 = vadd.xlane.f32.xlu1 %v1379_v13  ;;  %v2123_v52 = vadd.f32 %v4333_v4, %v4332_v14 }
 0x19b   :  { %v2175_v11 = vadd.f32 %v2174_v50, %v2173_v0  ;;  %v3932_v35 = vadd.f32 %v2236_v16, %v1226_v2  ;;  %v2239_v20 = vadd.f32 %v2238_v46, %v2237_v62  ;;  %v4334_v2 = vld [vmem:[#allocation12_spill] sm:$0xff]  ;;  %v4335_v16 = vld [vmem:[#allocation14_spill] sm:$0xff]  ;;  %v1056_v50 = vadd.f32 %v2062_v27, %v4336_v59 }
 0x19c   :  { %v2176_v25 = vpop.f32.mrf.mxu1  ;;  %v2240_v6 = vpop.f32.mrf.mxu0  ;;  %v2065_v13 = vadd.f32 %v4335_v16, %v4334_v2  ;;  %v1148_v32 = vadd.f32 %v2123_v52, %v1051_v5 }
 0x19d   :  { %v1229_v7 = vadd.f32 %v2175_v11, %v1132_v29  ;;  %v1382_v54 = vsel %vm1369_vm0, %v3932_v35, 0.0 }
 0x19e   :  { %v2177_v26 = vpop.f32.mrf.mxu1  ;;  %v2241_v15 = vpop.f32.mrf.mxu0  ;;  %1383 = vadd.xlane.f32.xlu0 %v1382_v54 }
 0x19f   :  { %v2178_v28 = vadd.f32 %v2177_v26, %v2176_v25  ;;  %v3941_v36 = vadd.f32 %v2239_v20, %v1229_v7  ;;  %v2242_v57 = vadd.f32 %v2241_v15, %v2240_v6  ;;  %v4337_v25 = vld [vmem:[#allocation10_spill] sm:$0xff]  ;;  %v4338_v6 = vld [vmem:[#allocation11_spill] sm:$0xff]  ;;  %v1059_v26 = vadd.f32 %v2065_v13, %v4339_v55 }
 0x1a0   :  { %v2179_v40 = vpop.f32.mrf.mxu1  ;;  %v2243_v8 = vpop.f32.mrf.mxu0  ;;  %v2126_v33 = vadd.f32 %v4338_v6, %v4337_v25  ;;  %v4353_v25 = vld [vmem:[#allocation23_spill] sm:$0xff] }
 0x1a1   :  { %v1234_v12 = vadd.f32 %v2178_v28, %v1137_v39  ;;  %v1385_v3 = vsel %vm1369_vm0, %v3941_v36, 0.0  ;;  %v4340_v28 = vld [vmem:[#allocation16_spill] sm:$0xff] }
 0x1a2   :  { %v2180_v23 = vpop.f32.mrf.mxu1  ;;  %v2244_v61 = vpop.f32.mrf.mxu0  ;;  %1386 = vadd.xlane.f32.xlu1 %v1385_v3  ;;  %v1153_v19 = vadd.f32 %v2126_v33, %v1056_v50  ;;  %v4343_v3 = vld [vmem:[#allocation15_spill] sm:$0xff] }
 0x1a3   :  { %v2181_v42 = vadd.f32 %v2180_v23, %v2179_v40  ;;  %v3950_v31 = vadd.f32 %v2242_v57, %v1234_v12  ;;  %v2245_v60 = vadd.f32 %v2244_v61, %v2243_v8  ;;  %v4341_v40 = vld [vmem:[#allocation18_spill] sm:$0xff]  ;;  %v4342_v57 = vld [vmem:[#allocation13_spill] sm:$0xff] }
 0x1a4   :  { %v2182_v21 = vpop.f32.mrf.mxu1  ;;  %v2246_v37 = vpop.f32.mrf.mxu0  ;;  %v2068_v8 = vadd.f32 %v4341_v40, %v4340_v28  ;;  %v2129_v58 = vadd.f32 %v4343_v3, %v4342_v57  ;;  %v4356_v28 = vld [vmem:[#allocation30_spill] sm:$0xff]  ;;  %v4357_v57 = vld [vmem:[#allocation25_spill] sm:$0xff]  ;;  %v4358_v3 = vld [vmem:[#allocation27_spill] sm:$0xff] }
 0x1a5   :  { %v1237_v17 = vadd.f32 %v2181_v42, %v1140_v38  ;;  %v1388_v44 = vsel %vm1369_vm0, %v3950_v31, 0.0 }
 0x1a6   :  { %v2183_v9 = vpop.f32.mrf.mxu1  ;;  %v2247_v1 = vpop.f32.mrf.mxu0  ;;  %1389 = vadd.xlane.f32.xlu0 %v1388_v44  ;;  %v1156_v18 = vadd.f32 %v2129_v58, %v1059_v26  ;;  %v4345_v44 = vld [vmem:[#allocation20_spill] sm:$0xff]  ;;  %v2138_v58 = vadd.f32 %v4358_v3, %v4357_v57 }
 0x1a7   :  { %v2184_v30 = vadd.f32 %v2183_v9, %v2182_v21  ;;  %v3959_v43 = vadd.f32 %v2245_v60, %v1237_v17  ;;  %v2248_v0 = vadd.f32 %v2247_v1, %v2246_v37  ;;  %v4344_v17 = vld [vmem:[#allocation4_spill] sm:$0xff] }
 0x1a8   :  { %v2185_v22 = vpop.f32.mrf.mxu1  ;;  %v2249_v49 = vpop.f32.mrf.mxu0  ;;  %v1064_v60 = vadd.f32 %v2068_v8, %v4344_v17  ;;  %v4359_v17 = vld [vmem:[#allocation7_spill] sm:$0xff] }
 0x1a9   :  { %v1242_v63 = vadd.f32 %v2184_v30, %v1145_v47  ;;  %v1391_v62 = vsel %vm1369_vm0, %v3959_v43, 0.0  ;;  %v4346_v47 = vld [vmem:[#allocation22_spill] sm:$0xff] }
 0x1aa   :  { %v2186_v53 = vpop.f32.mrf.mxu1  ;;  %v2250_v29 = vpop.f32.mrf.mxu0  ;;  %1392 = vadd.xlane.f32.xlu1 %v1391_v62  ;;  %v2071_v9 = vadd.f32 %v4346_v47, %v4345_v44  ;;  %v4350_v62 = vld [vmem:[#allocation26_spill] sm:$0xff] }
 0x1ab   :  { %v2187_v46 = vadd.f32 %v2186_v53, %v2185_v22  ;;  %v3968_v51 = vadd.f32 %v2248_v0, %v1242_v63  ;;  %v2251_v20 = vadd.f32 %v2250_v29, %v2249_v49  ;;  %v4347_v22 = vld [vmem:[#allocation17_spill] sm:$0xff]  ;;  %v4348_v49 = vld [vmem:[#allocation19_spill] sm:$0xff]  ;;  %v4349_v0 = vld [vmem:[#allocation24_spill] sm:$0xff] }
 0x1ac   :  { %v2188_v10 = vpop.f32.mrf.mxu1  ;;  %v2252_v11 = vpop.f32.mrf.mxu0  ;;  %v2132_v14 = vadd.f32 %v4348_v49, %v4347_v22  ;;  %v2074_v2 = vadd.f32 %v4350_v62, %v4349_v0  ;;  %v4351_v29 = vld [vmem:[#allocation5_spill] sm:$0xff]  ;;  %v4361_v22 = vld [vmem:[#allocation31_spill] sm:$0xff] }
 0x1ad   :  { %v1245_v7 = vadd.f32 %v2187_v46, %v1148_v32  ;;  %v1394_v54 = vsel %vm1369_vm0, %v3968_v51, 0.0  ;;  %v1067_v32 = vadd.f32 %v2071_v9, %v4351_v29 }
 0x1ae   :  { %v2189_v15 = vpop.f32.mrf.mxu1  ;;  %v2253_v39 = vpop.f32.mrf.mxu0  ;;  %1395 = vadd.xlane.f32.xlu0 %v1394_v54  ;;  %v1161_v53 = vadd.f32 %v2132_v14, %v1064_v60  ;;  %v4354_v54 = vld [vmem:[#allocation6_spill] sm:$0xff] }
 0x1af   :  { %v2190_v48 = vadd.f32 %v2189_v15, %v2188_v10  ;;  %v3977_v12 = vadd.f32 %v2251_v20, %v1245_v7  ;;  %v2254_v34 = vadd.f32 %v2253_v39, %v2252_v11  ;;  %v4352_v11 = vld [vmem:[#allocation21_spill] sm:$0xff]  ;;  %v1072_v55 = vadd.f32 %v2074_v2, %v4354_v54 }
 0x1b0   :  { %v2191_v23 = vpop.f32.mrf.mxu1  ;;  %v2255_v61 = vpop.f32.mrf.mxu0  ;;  %v2135_v6 = vadd.f32 %v4353_v25, %v4352_v11 }
 0x1b1   :  { %v1250_v38 = vadd.f32 %v2190_v48, %v1153_v19  ;;  %v1397_v42 = vsel %vm1369_vm0, %v3977_v12, 0.0  ;;  %v4355_v19 = vld [vmem:[#allocation28_spill] sm:$0xff] }
 0x1b2   :  { %v2192_v21 = vpop.f32.mrf.mxu1  ;;  %v2256_v37 = vpop.f32.mrf.mxu0  ;;  %1398 = vadd.xlane.f32.xlu1 %v1397_v42  ;;  %v1164_v39 = vadd.f32 %v2135_v6, %v1067_v32  ;;  %v2077_v40 = vadd.f32 %v4356_v28, %v4355_v19 }
 0x1b3   :  { %v2193_v1 = vadd.f32 %v2192_v21, %v2191_v23  ;;  %v3986_v5 = vadd.f32 %v2254_v34, %v1250_v38  ;;  %v2257_v52 = vadd.f32 %v2256_v37, %v2255_v61 }
 0x1b4   :  { %v2194_v27 = vpop.f32.mrf.mxu1  ;;  %v2258_v30 = vpop.f32.mrf.mxu0  ;;  %v1075_v60 = vadd.f32 %v2077_v40, %v4359_v17 }
 0x1b5   :  { %v1253_v4 = vadd.f32 %v2193_v1, %v1156_v18  ;;  %v1400_v63 = vsel %vm1369_vm0, %v3986_v5, 0.0  ;;  %v1169_v18 = vadd.f32 %v2138_v58, %v1072_v55 }
 0x1b6   :  { %v2195_v16 = vpop.f32.mrf.mxu1  ;;  %v2259_v13 = vpop.f32.mrf.mxu0  ;;  %1401 = vadd.xlane.f32.xlu0 %v1400_v63 }
 0x1b7   :  { %v2196_v59 = vadd.f32 %v2195_v16, %v2194_v27  ;;  %v3995_v50 = vadd.f32 %v2257_v52, %v1253_v4  ;;  %v2260_v7 = vadd.f32 %v2259_v13, %v2258_v30  ;;  %v4360_v30 = vld [vmem:[#allocation29_spill] sm:$0xff] }
 0x1b8   :  { %v2197_v46 = vpop.f32.mrf.mxu1  ;;  %v2261_v10 = vpop.f32.mrf.mxu0  ;;  %v2141_v49 = vadd.f32 %v4361_v22, %v4360_v30 }
 0x1b9   :  { %v1258_v33 = vadd.f32 %v2196_v59, %v1161_v53  ;;  %v1403_v20 = vsel %vm1369_vm0, %v3995_v50, 0.0  ;;  %v2321_v59 = vmov 0  }
 0x1ba   :  { %v2198_v26 = vpop.f32.mrf.mxu1  ;;  %v2262_v15 = vpop.f32.mrf.mxu0  ;;  %1404 = vadd.xlane.f32.xlu1 %v1403_v20  ;;  %v1172_v0 = vadd.f32 %v2141_v49, %v1075_v60  ;;  %2288 = vset.pattern.permute.xlu0 %v2321_v59 }
 0x1bb   :  { %v2199_v8 = vadd.f32 %v2198_v26, %v2197_v46  ;;  %v4004_v48 = vadd.f32 %v2260_v7, %v1258_v33  ;;  %v2263_v34 = vadd.f32 %v2262_v15, %v2261_v10  ;;  %2287 = vset.pattern.permute.xlu1 %v2321_v59 }
 0x1bc   :  { %v2200_v23 = vpop.f32.mrf.mxu1  ;;  %v2264_v61 = vpop.f32.mrf.mxu0 }
 0x1bd   :  { %v1261_v38 = vadd.f32 %v2199_v8, %v1164_v39  ;;  %v1406_v42 = vsel %vm1369_vm0, %v4004_v48, 0.0 }
 0x1be   :  { %v2201_v21 = vpop.f32.mrf.mxu1  ;;  %1407 = vadd.xlane.f32.xlu0 %v1406_v42  ;;  %v2265_v37 = vpop.f32.mrf.mxu0 }
 0x1bf   :  { %v2202_v44 = vadd.f32 %v2201_v21, %v2200_v23  ;;  %v2266_v47 = vadd.f32 %v2265_v37, %v2264_v61  ;;  %v4011_v9 = vadd.f32 %v2263_v34, %v1261_v38 }
 0x1c0   :  { %v2203_v1 = vpop.f32.mrf.mxu1  ;;  %v2267_v27 = vpop.f32.mrf.mxu0 }
 0x1c1   :  { %v1266_v14 = vadd.f32 %v2202_v44, %v1169_v18  ;;  %v1409_v4 = vsel %vm1369_vm0, %v4011_v9, 0.0 }
 0x1c2   :  { %v2204_v52 = vpop.f32.mrf.mxu1  ;;  %1410 = vadd.xlane.f32.xlu1 %v1409_v4  ;;  %v2268_v63 = vpop.f32.mrf.mxu0 }
 0x1c3   :  { %v2205_v62 = vadd.f32 %v2204_v52, %v2203_v1  ;;  %v2269_v2 = vadd.f32 %v2268_v63, %v2267_v27  ;;  %v4017_v16 = vadd.f32 %v2266_v47, %v1266_v14 }
 0x1c5   :  { %v1269_v13 = vadd.f32 %v2205_v62, %v1172_v0  ;;  %v1412_v53 = vsel %vm1369_vm0, %v4017_v16, 0.0 }
 0x1c6   :  { %1413 = vadd.xlane.f32.xlu0 %v1412_v53 }
 0x1c7   :  { %v4021_v29 = vadd.f32 %v2269_v2, %v1269_v13 }
 0x1c9   :  { %v1415_v32 = vsel %vm1369_vm0, %v4021_v29, 0.0 }
 0x1ca   :  { %1416 = vadd.xlane.f32.xlu1 %v1415_v32 }
 0x217   :  { %v1372_v46 = vpop.xlane.xlu0 %1371 }
 0x218   :  { %v1418_v10 = vmul.f32 0.020408163, %v1372_v46 }
 0x21a   :  { %v4026_v11 = vsub.f32 %v3896_v24, %v1418_v10 }
 0x21b   :  { %v1375_v25 = vpop.xlane.xlu0 %1374 }
 0x21c   :  { %v1419_v6 = vmul.f32 0.020408163, %v1375_v25  ;;  %v1450_v33 = vmul.f32 %v4026_v11, %v4026_v11 }
 0x21e   :  { %v4031_v7 = vsub.f32 %v3905_v56, %v1419_v6  ;;  %v1466_v20 = vsel %vm1369_vm0, %v1450_v33, 0.0 }
 0x21f   :  { %v1378_v54 = vpop.xlane.xlu1 %1377  ;;  %1467 = vadd.xlane.f32.xlu0 %v1466_v20 }
 0x220   :  { %v1420_v55 = vmul.f32 0.020408163, %v1378_v54  ;;  %v1451_v26 = vmul.f32 %v4031_v7, %v4031_v7 }
 0x222   :  { %v4037_v15 = vsub.f32 %v3914_v45, %v1420_v55  ;;  %v1469_v24 = vsel %vm1369_vm0, %v1451_v26, 0.0 }
 0x223   :  { %v1381_v39 = vpop.xlane.xlu1 %1380  ;;  %1470 = vadd.xlane.f32.xlu1 %v1469_v24 }
 0x224   :  { %v1421_v19 = vmul.f32 0.020408163, %v1381_v39  ;;  %v1452_v56 = vmul.f32 %v4037_v15, %v4037_v15 }
 0x226   :  { %v4043_v28 = vsub.f32 %v3923_v41, %v1421_v19  ;;  %v1472_v40 = vsel %vm1369_vm0, %v1452_v56, 0.0 }
 0x227   :  { %1473 = vadd.xlane.f32.xlu0 %v1472_v40  ;;  %v1384_v8 = vpop.xlane.xlu0 %1383  ;;  %v1690_v40 = vld [vmem:[%s4299_s3] sm:$0xff] }
 0x228   :  { %v1422_v57 = vmul.f32 0.020408163, %v1384_v8  ;;  %v1453_v45 = vmul.f32 %v4043_v28, %v4043_v28  ;;  %v1692_v8 = vld [vmem:[%s4299_s3 + $0x10] sm:$0xff] }
 0x22a   :  { %v4049_v3 = vsub.f32 %v3932_v35, %v1422_v57  ;;  %v1475_v58 = vsel %vm1369_vm0, %v1453_v45, 0.0  ;;  %v1691_v57 = vld [vmem:[%s4299_s3 + $0x8] sm:$0xff]  ;;  %v1696_v45 = vld [vmem:[%s4299_s3 + $0x30] sm:$0xff] }
 0x22b   :  { %v1387_v23 = vpop.xlane.xlu1 %1386  ;;  %1476 = vadd.xlane.f32.xlu1 %v1475_v58  ;;  %v1693_v58 = vld [vmem:[%s4299_s3 + $0x18] sm:$0xff] }
 0x22c   :  { %v1423_v61 = vmul.f32 0.020408163, %v1387_v23  ;;  %v1454_v41 = vmul.f32 %v4049_v3, %v4049_v3  ;;  %v1695_v23 = vld [vmem:[%s4299_s3 + $0x28] sm:$0xff] }
 0x22e   :  { %v4055_v38 = vsub.f32 %v3941_v36, %v1423_v61  ;;  %v1478_v34 = vsel %vm1369_vm0, %v1454_v41, 0.0  ;;  %v1697_v61 = vld [vmem:[%s4299_s3 + $0x38] sm:$0xff]  ;;  %v1699_v41 = vld [vmem:[%s4299_s3 + $0x48] sm:$0xff] }
 0x22f   :  { %1479 = vadd.xlane.f32.xlu0 %v1478_v34  ;;  %v1390_v42 = vpop.xlane.xlu0 %1389  ;;  %v1701_v34 = vld [vmem:[%s4299_s3 + $0x58] sm:$0xff] }
 0x230   :  { %v1424_v18 = vmul.f32 0.020408163, %v1390_v42  ;;  %v1455_v35 = vmul.f32 %v4055_v38, %v4055_v38  ;;  %v1703_v42 = vld [vmem:[%s4299_s3 + $0x68] sm:$0xff] }
 0x232   :  { %v4061_v21 = vsub.f32 %v3950_v31, %v1424_v18  ;;  %v1481_v37 = vsel %vm1369_vm0, %v1455_v35, 0.0 }
 0x233   :  { %v1393_v17 = vpop.xlane.xlu1 %1392  ;;  %1482 = vadd.xlane.f32.xlu1 %v1481_v37 }
 0x234   :  { %v1425_v60 = vmul.f32 0.020408163, %v1393_v17  ;;  %v1456_v36 = vmul.f32 %v4061_v21, %v4061_v21 }
 0x236   :  { %v4067_v44 = vsub.f32 %v3959_v43, %v1425_v60  ;;  %v1484_v47 = vsel %vm1369_vm0, %v1456_v36, 0.0  ;;  %v1698_v36 = vld [vmem:[%s4299_s3 + $0x40] sm:$0xff] }
 0x237   :  { %1485 = vadd.xlane.f32.xlu0 %v1484_v47  ;;  %v1396_v1 = vpop.xlane.xlu0 %1395  ;;  %v1700_v47 = vld [vmem:[%s4299_s3 + $0x50] sm:$0xff] }
 0x238   :  { %v1426_v27 = vmul.f32 0.020408163, %v1396_v1  ;;  %v1457_v31 = vmul.f32 %v4067_v44, %v4067_v44 }
 0x23a   :  { %v4073_v30 = vsub.f32 %v3968_v51, %v1426_v27  ;;  %v1487_v22 = vsel %vm1369_vm0, %v1457_v31, 0.0 }
 0x23b   :  { %v1399_v49 = vpop.xlane.xlu1 %1398  ;;  %1488 = vadd.xlane.f32.xlu1 %v1487_v22 }
 0x23c   :  { %v1427_v14 = vmul.f32 0.020408163, %v1399_v49  ;;  %v1458_v43 = vmul.f32 %v4073_v30, %v4073_v30 }
 0x23e   :  { %v4079_v4 = vsub.f32 %v3977_v12, %v1427_v14  ;;  %v1490_v52 = vsel %vm1369_vm0, %v1458_v43, 0.0 }
 0x23f   :  { %1491 = vadd.xlane.f32.xlu0 %v1490_v52  ;;  %v1402_v63 = vpop.xlane.xlu0 %1401 }
 0x240   :  { %v1428_v0 = vmul.f32 0.020408163, %v1402_v63  ;;  %v1459_v51 = vmul.f32 %v4079_v4, %v4079_v4 }
 0x242   :  { %v4085_v62 = vsub.f32 %v3986_v5, %v1428_v0  ;;  %v1493_v2 = vsel %vm1369_vm0, %v1459_v51, 0.0 }
 0x243   :  { %v1405_v13 = vpop.xlane.xlu1 %1404  ;;  %1494 = vadd.xlane.f32.xlu1 %v1493_v2 }
 0x244   :  { %v1429_v53 = vmul.f32 0.020408163, %v1405_v13  ;;  %v1460_v12 = vmul.f32 %v4085_v62, %v4085_v62 }
 0x246   :  { %v4091_v32 = vsub.f32 %v3995_v50, %v1429_v53  ;;  %v1496_v59 = vsel %vm1369_vm0, %v1460_v12, 0.0  ;;  %v1562_v53 = vld [vmem:[%s4300_s2] sm:$0xff] }
 0x247   :  { %1497 = vadd.xlane.f32.xlu0 %v1496_v59  ;;  %v1408_v46 = vpop.xlane.xlu0 %1407 }
 0x248   :  { %v1430_v10 = vmul.f32 0.020408163, %v1408_v46  ;;  %v1461_v5 = vmul.f32 %v4091_v32, %v4091_v32 }
 0x24a   :  { %v4097_v25 = vsub.f32 %v4004_v48, %v1430_v10  ;;  %v1499_v6 = vsel %vm1369_vm0, %v1461_v5, 0.0 }
 0x24b   :  { %v1411_v33 = vpop.xlane.xlu1 %1410  ;;  %1500 = vadd.xlane.f32.xlu1 %v1499_v6  ;;  %v1563_v6 = vld [vmem:[%s4300_s2 + $0x8] sm:$0xff] }
 0x24c   :  { %v1431_v20 = vmul.f32 0.020408163, %v1411_v33  ;;  %v1462_v50 = vmul.f32 %v4097_v25, %v4097_v25 }
 0x24e   :  { %v4103_v54 = vsub.f32 %v4011_v9, %v1431_v20  ;;  %v1502_v55 = vsel %vm1369_vm0, %v1462_v50, 0.0 }
 0x24f   :  { %1503 = vadd.xlane.f32.xlu0 %v1502_v55  ;;  %v1414_v26 = vpop.xlane.xlu0 %1413 }
 0x250   :  { %v1432_v24 = vmul.f32 0.020408163, %v1414_v26  ;;  %v1463_v48 = vmul.f32 %v4103_v54, %v4103_v54 }
 0x252   :  { %v4109_v39 = vsub.f32 %v4017_v16, %v1432_v24  ;;  %v1505_v19 = vsel %vm1369_vm0, %v1463_v48, 0.0  ;;  %v1694_v16 = vld [vmem:[%s4299_s3 + $0x20] sm:$0xff]  ;;  %v1564_v24 = vld [vmem:[%s4300_s2 + $0x10] sm:$0xff] }
 0x253   :  { %1506 = vadd.xlane.f32.xlu1 %v1505_v19  ;;  %v1417_v18 = vpop.xlane.xlu1 %1416 }
 0x254   :  { %v1464_v56 = vmul.f32 %v4109_v39, %v4109_v39  ;;  %v1433_v35 = vmul.f32 0.020408163, %v1417_v18 }
 0x256   :  { %v1508_v9 = vsel %vm1369_vm0, %v1464_v56, 0.0  ;;  %v4149_v37 = vsub.f32 %v4021_v29, %v1433_v35  ;;  %v1702_v29 = vld [vmem:[%s4299_s3 + $0x60] sm:$0xff] }
 0x257   :  { %1509 = vadd.xlane.f32.xlu0 %v1508_v9 }
 0x258   :  { %v1465_v17 = vmul.f32 %v4149_v37, %v4149_v37 }
 0x25a   :  { %v1511_v60 = vsel %vm1369_vm0, %v1465_v17, 0.0  ;;  %v1567_v17 = vld [vmem:[%s4300_s2 + $0x28] sm:$0xff] }
 0x264   :  { %1708 = vperm.xlu1 %2287, %v1690_v40  }
 0x268   :  { %1718 = vperm.xlu1 %2287, %v1692_v8   ;;  %v1565_v8 = vld [vmem:[%s4300_s2 + $0x18] sm:$0xff] }
 0x26c   :  { %1728 = vperm.xlu1 %2287, %v1694_v16  }
 0x26d   :  { %1713 = vperm.xlu0 %2288, %v1691_v57  }
 0x270   :  { %1738 = vperm.xlu1 %2287, %v1696_v45  }
 0x271   :  { %1723 = vperm.xlu0 %2288, %v1693_v58  }
 0x275   :  { %1733 = vperm.xlu0 %2288, %v1695_v23  }
 0x279   :  { %1743 = vperm.xlu0 %2288, %v1697_v61   ;;  %v1566_v61 = vld [vmem:[%s4300_s2 + $0x20] sm:$0xff] }
 0x27d   :  { %1753 = vperm.xlu0 %2288, %v1699_v41  }
 0x281   :  { %1763 = vperm.xlu0 %2288, %v1701_v34  }
 0x285   :  { %1773 = vperm.xlu0 %2288, %v1703_v42  }
 0x294   :  { %1512 = vadd.xlane.f32.xlu1 %v1511_v60 }
 0x2a5   :  { %1748 = vperm.xlu1 %2287, %v1698_v36  }
 0x2a8   :  { %v1468_v1 = vpop.xlane.xlu0 %1467 }
 0x2a9   :  { %v1514_v27 = vmul.f32 0.020408163, %v1468_v1  ;;  %1758 = vperm.xlu1 %2287, %v1700_v47  }
 0x2ab   :  { %v1530_v31 = vadd.f32 1e-05, %v1514_v27 }
 0x2ac   :  { %v1471_v22 = vpop.xlane.xlu1 %1470 }
 0x2ad   :  { %2289 = vrsqrt.f32 %v1530_v31  ;;  %v1515_v49 = vmul.f32 0.020408163, %v1471_v22  ;;  %1768 = vperm.xlu1 %2287, %v1702_v29   ;;  %v1568_v29 = vld [vmem:[%s4300_s2 + $0x30] sm:$0xff] }
 0x2af   :  { %v1531_v14 = vadd.f32 1e-05, %v1515_v49 }
 0x2b0   :  { %v1474_v43 = vpop.xlane.xlu0 %1473 }
 0x2b1   :  { %2291 = vrsqrt.f32 %v1531_v14  ;;  %v1516_v52 = vmul.f32 0.020408163, %v1474_v43 }
 0x2b3   :  { %v1532_v63 = vadd.f32 1e-05, %v1516_v52  ;;  %v1569_v52 = vld [vmem:[%s4300_s2 + $0x38] sm:$0xff] }
 0x2b4   :  { %v1477_v0 = vpop.xlane.xlu1 %1476 }
 0x2b5   :  { %2293 = vrsqrt.f32 %v1532_v63  ;;  %v1517_v51 = vmul.f32 0.020408163, %v1477_v0 }
 0x2b7   :  { %v1533_v2 = vadd.f32 1e-05, %v1517_v51 }
 0x2b8   :  { %v1480_v13 = vpop.xlane.xlu0 %1479 }
 0x2b9   :  { %2295 = vrsqrt.f32 %v1533_v2  ;;  %v1518_v12 = vmul.f32 0.020408163, %v1480_v13 }
 0x2ba   :  { %v2290_v59 = vpop.eup %2289 }
 0x2bb   :  { %v1534_v46 = vadd.f32 1e-05, %v1518_v12  ;;  %v1578_v10 = vmul.f32 %v2290_v59, %v1562_v53  ;;  %v1570_v53 = vld [vmem:[%s4300_s2 + $0x40] sm:$0xff] }
 0x2bc   :  { %v1483_v5 = vpop.xlane.xlu1 %1482 }
 0x2bd   :  { %2297 = vrsqrt.f32 %v1534_v46  ;;  %v1519_v33 = vmul.f32 0.020408163, %v1483_v5  ;;  %1596 = vperm.xlu0 %2288, %v1578_v10  }
 0x2be   :  { %v2292_v20 = vpop.eup %2291 }
 0x2bf   :  { %v1535_v50 = vadd.f32 1e-05, %v1519_v33  ;;  %v1579_v55 = vmul.f32 %v2292_v20, %v1563_v6  ;;  %v1571_v6 = vld [vmem:[%s4300_s2 + $0x48] sm:$0xff] }
 0x2c0   :  { %v1486_v26 = vpop.xlane.xlu0 %1485 }
 0x2c1   :  { %2299 = vrsqrt.f32 %v1535_v50  ;;  %v1520_v48 = vmul.f32 0.020408163, %v1486_v26  ;;  %1601 = vperm.xlu1 %2287, %v1579_v55  }
 0x2c2   :  { %v2294_v19 = vpop.eup %2293 }
 0x2c3   :  { %v1536_v56 = vadd.f32 1e-05, %v1520_v48  ;;  %v1580_v9 = vmul.f32 %v2294_v19, %v1564_v24  ;;  %v1572_v24 = vld [vmem:[%s4300_s2 + $0x50] sm:$0xff] }
 0x2c4   :  { %v1489_v40 = vpop.xlane.xlu1 %1488 }
 0x2c5   :  { %2301 = vrsqrt.f32 %v1536_v56  ;;  %v1521_v16 = vmul.f32 0.020408163, %v1489_v40  ;;  %1606 = vperm.xlu1 %2287, %v1580_v9   ;;  %v1573_v40 = vld [vmem:[%s4300_s2 + $0x58] sm:$0xff] }
 0x2c6   :  { %v2296_v57 = vpop.eup %2295 }
 0x2c7   :  { %v1537_v45 = vadd.f32 1e-05, %v1521_v16  ;;  %v1581_v58 = vmul.f32 %v2296_v57, %v1565_v8  ;;  %v1574_v57 = vld [vmem:[%s4300_s2 + $0x60] sm:$0xff] }
 0x2c8   :  { %v1492_v23 = vpop.xlane.xlu0 %1491 }
 0x2c9   :  { %2303 = vrsqrt.f32 %v1537_v45  ;;  %v1522_v41 = vmul.f32 0.020408163, %v1492_v23  ;;  %1611 = vperm.xlu1 %2287, %v1581_v58   ;;  %v1575_v23 = vld [vmem:[%s4300_s2 + $0x68] sm:$0xff] }
 0x2ca   :  { %v2298_v34 = vpop.eup %2297 }
 0x2cb   :  { %v1538_v42 = vadd.f32 1e-05, %v1522_v41  ;;  %v1582_v18 = vmul.f32 %v2298_v34, %v1566_v61  ;;  %v1576_v34 = vld [vmem:[%s4300_s2 + $0x70] sm:$0xff] }
 0x2cc   :  { %v1495_v35 = vpop.xlane.xlu1 %1494 }
 0x2cd   :  { %2305 = vrsqrt.f32 %v1538_v42  ;;  %v1523_v60 = vmul.f32 0.020408163, %v1495_v35  ;;  %1616 = vperm.xlu1 %2287, %v1582_v18   ;;  %v1704_v35 = vld [vmem:[%s4299_s3 + $0x70] sm:$0xff] }
 0x2ce   :  { %v2300_v36 = vpop.eup %2299 }
 0x2cf   :  { %v1539_v47 = vadd.f32 1e-05, %v1523_v60  ;;  %v1583_v1 = vmul.f32 %v2300_v36, %v1567_v17 }
 0x2d0   :  { %v1498_v27 = vpop.xlane.xlu0 %1497 }
 0x2d1   :  { %2307 = vrsqrt.f32 %v1539_v47  ;;  %v1524_v31 = vmul.f32 0.020408163, %v1498_v27  ;;  %1621 = vperm.xlu1 %2287, %v1583_v1  }
 0x2d2   :  { %v2302_v22 = vpop.eup %2301 }
 0x2d3   :  { %v1540_v49 = vadd.f32 1e-05, %v1524_v31  ;;  %v1584_v14 = vmul.f32 %v2302_v22, %v1568_v29 }
 0x2d4   :  { %v1501_v43 = vpop.xlane.xlu1 %1500 }
 0x2d5   :  { %2309 = vrsqrt.f32 %v1540_v49  ;;  %v1525_v63 = vmul.f32 0.020408163, %v1501_v43  ;;  %1626 = vperm.xlu1 %2287, %v1584_v14  }
 0x2d6   :  { %v2304_v0 = vpop.eup %2303 }
 0x2d7   :  { %v1541_v51 = vadd.f32 1e-05, %v1525_v63  ;;  %v1585_v2 = vmul.f32 %v2304_v0, %v1569_v52  ;;  %v1577_v0 = vld [vmem:[%s4300_s2 + $0x78] sm:$0xff] }
 0x2d8   :  { %v1504_v13 = vpop.xlane.xlu0 %1503 }
 0x2d9   :  { %2311 = vrsqrt.f32 %v1541_v51  ;;  %v1526_v12 = vmul.f32 0.020408163, %v1504_v13  ;;  %1631 = vperm.xlu1 %2287, %v1585_v2  }
 0x2da   :  { %v2306_v59 = vpop.eup %2305 }
 0x2db   :  { %v1542_v46 = vadd.f32 1e-05, %v1526_v12  ;;  %v1586_v10 = vmul.f32 %v2306_v59, %v1570_v53  ;;  %v1705_v12 = vld [vmem:[%s4299_s3 + $0x78] sm:$0xff] }
 0x2dc   :  { %v1507_v5 = vpop.xlane.xlu1 %1506 }
 0x2dd   :  { %2313 = vrsqrt.f32 %v1542_v46  ;;  %v1527_v33 = vmul.f32 0.020408163, %v1507_v5  ;;  %1636 = vperm.xlu1 %2287, %v1586_v10  }
 0x2de   :  { %v2308_v20 = vpop.eup %2307 }
 0x2df   :  { %v1543_v50 = vadd.f32 1e-05, %v1527_v33  ;;  %v1587_v55 = vmul.f32 %v2308_v20, %v1571_v6 }
 0x2e0   :  { %v1510_v26 = vpop.xlane.xlu0 %1509  ;;  %v1709_v17 = vpop.permute.xlu1 %1708 }
 0x2e1   :  { %2315 = vrsqrt.f32 %v1543_v50  ;;  %v1528_v48 = vmul.f32 0.020408163, %v1510_v26  ;;  %1641 = vperm.xlu0 %2288, %v1587_v55  }
 0x2e2   :  { %v2310_v19 = vpop.eup %2309 }
 0x2e3   :  { %v1544_v56 = vadd.f32 1e-05, %v1528_v48  ;;  %v1588_v9 = vmul.f32 %v2310_v19, %v1572_v24 }
 0x2e4   :  { %v1719_v60 = vpop.permute.xlu1 %1718 }
 0x2e5   :  { %2317 = vrsqrt.f32 %v1544_v56  ;;  %1646 = vperm.xlu1 %2287, %v1588_v9  }
 0x2e6   :  { %v2312_v8 = vpop.eup %2311 }
 0x2e7   :  { %v1589_v16 = vmul.f32 %v2312_v8, %v1573_v40 }
 0x2e8   :  { %v1714_v36 = vpop.permute.xlu0 %1713  ;;  %v1729_v47 = vpop.permute.xlu1 %1728 }
 0x2e9   :  { %1651 = vperm.xlu0 %2288, %v1589_v16  }
 0x2ea   :  { %v2314_v45 = vpop.eup %2313 }
 0x2eb   :  { %v1590_v58 = vmul.f32 %v2314_v45, %v1574_v57 }
 0x2ec   :  { %v1724_v1 = vpop.permute.xlu0 %1723  ;;  %v1739_v27 = vpop.permute.xlu1 %1738 }
 0x2ed   :  { %1656 = vperm.xlu1 %2287, %v1590_v58  }
 0x2ee   :  { %v2316_v61 = vpop.eup %2315 }
 0x2ef   :  { %v1591_v41 = vmul.f32 %v2316_v61, %v1575_v23 }
 0x2f0   :  { %v1734_v29 = vpop.permute.xlu0 %1733 }
 0x2f1   :  { %1661 = vperm.xlu0 %2288, %v1591_v41  }
 0x2f2   :  { %v2318_v42 = vpop.eup %2317 }
 0x2f3   :  { %v1592_v18 = vmul.f32 %v2318_v42, %v1576_v34 }
 0x2f4   :  { %v1744_v14 = vpop.permute.xlu0 %1743 }
 0x2f5   :  { %1666 = vperm.xlu1 %2287, %v1592_v18  }
 0x2f8   :  { %v1754_v43 = vpop.permute.xlu0 %1753 }
 0x2f9   :  { %1778 = vperm.xlu1 %2287, %v1704_v35  }
 0x2fc   :  { %v1764_v63 = vpop.permute.xlu0 %1763 }
 0x300   :  { %v1774_v53 = vpop.permute.xlu0 %1773 }
 0x31d   :  { %v1513_v31 = vpop.xlane.xlu1 %1512 }
 0x31e   :  { %v1529_v22 = vmul.f32 0.020408163, %v1513_v31 }
 0x320   :  { %v1545_v49 = vadd.f32 1e-05, %v1529_v22 }
 0x321   :  { %v1749_v52 = vpop.permute.xlu1 %1748 }
 0x322   :  { %2319 = vrsqrt.f32 %v1545_v49 }
 0x325   :  { %v1759_v13 = vpop.permute.xlu1 %1758 }
 0x329   :  { %v1769_v59 = vpop.permute.xlu1 %1768 }
 0x32f   :  { %v2320_v51 = vpop.eup %2319 }
 0x330   :  { %v1593_v2 = vmul.f32 %v2320_v51, %v1577_v0 }
 0x332   :  { %1671 = vperm.xlu0 %2288, %v1593_v2  }
 0x336   :  { %1783 = vperm.xlu0 %2288, %v1705_v12  }
 0x338   :  { %v1597_v46 = vpop.permute.xlu0 %1596 }
 0x339   :  { %v1674_v10 = vmul.f32 %v1597_v46, %v4026_v11 }
 0x33b   :  { %v1786_v5 = vadd.f32 %v1709_v17, %v1674_v10 }
 0x33c   :  { %v1602_v6 = vpop.permute.xlu1 %1601 }
 0x33d   :  { %1802 = vst.msk [vmem:[%s4301_s4] sm:$0xff] %vm1369_vm0, %v1786_v5  ;;  %v1675_v33 = vmul.f32 %v1602_v6, %v4031_v7 }
 0x33f   :  { %v1787_v20 = vadd.f32 %v1714_v36, %v1675_v33 }
 0x340   :  { %v1607_v50 = vpop.permute.xlu1 %1606 }
 0x341   :  { %1803 = vst.msk [vmem:[%s4301_s4 + $0x8] sm:$0xff] %vm1369_vm0, %v1787_v20  ;;  %v1676_v55 = vmul.f32 %v1607_v50, %v4037_v15 }
 0x343   :  { %v1788_v26 = vadd.f32 %v1719_v60, %v1676_v55 }
 0x344   :  { %v1612_v11 = vpop.permute.xlu1 %1611 }
 0x345   :  { %1804 = vst.msk [vmem:[%s4301_s4 + $0x10] sm:$0xff] %vm1369_vm0, %v1788_v26  ;;  %v1677_v24 = vmul.f32 %v1612_v11, %v4043_v28 }
 0x347   :  { %v1789_v48 = vadd.f32 %v1724_v1, %v1677_v24 }
 0x348   :  { %v1617_v7 = vpop.permute.xlu1 %1616 }
 0x349   :  { %1805 = vst.msk [vmem:[%s4301_s4 + $0x18] sm:$0xff] %vm1369_vm0, %v1789_v48  ;;  %v1678_v19 = vmul.f32 %v1617_v7, %v4049_v3 }
 0x34b   :  { %v1790_v56 = vadd.f32 %v1729_v47, %v1678_v19 }
 0x34c   :  { %v1622_v15 = vpop.permute.xlu1 %1621 }
 0x34d   :  { %1806 = vst.msk [vmem:[%s4301_s4 + $0x20] sm:$0xff] %vm1369_vm0, %v1790_v56  ;;  %v1679_v9 = vmul.f32 %v1622_v15, %v4055_v38 }
 0x34f   :  { %v1791_v40 = vadd.f32 %v1734_v29, %v1679_v9 }
 0x350   :  { %v1627_v28 = vpop.permute.xlu1 %1626 }
 0x351   :  { %1807 = vst.msk [vmem:[%s4301_s4 + $0x28] sm:$0xff] %vm1369_vm0, %v1791_v40  ;;  %v1680_v8 = vmul.f32 %v1627_v28, %v4061_v21 }
 0x353   :  { %v1792_v16 = vadd.f32 %v1739_v27, %v1680_v8 }
 0x354   :  { %v1632_v3 = vpop.permute.xlu1 %1631 }
 0x355   :  { %1808 = vst.msk [vmem:[%s4301_s4 + $0x30] sm:$0xff] %vm1369_vm0, %v1792_v16  ;;  %v1681_v57 = vmul.f32 %v1632_v3, %v4067_v44 }
 0x357   :  { %v1793_v45 = vadd.f32 %v1744_v14, %v1681_v57 }
 0x358   :  { %v1637_v38 = vpop.permute.xlu1 %1636 }
 0x359   :  { %1809 = vst.msk [vmem:[%s4301_s4 + $0x38] sm:$0xff] %vm1369_vm0, %v1793_v45  ;;  %v1682_v58 = vmul.f32 %v1637_v38, %v4073_v30 }
 0x35b   :  { %v1794_v23 = vadd.f32 %v1749_v52, %v1682_v58 }
 0x35c   :  { %v1642_v21 = vpop.permute.xlu0 %1641 }
 0x35d   :  { %1810 = vst.msk [vmem:[%s4301_s4 + $0x40] sm:$0xff] %vm1369_vm0, %v1794_v23  ;;  %v1683_v61 = vmul.f32 %v1642_v21, %v4079_v4 }
 0x35f   :  { %v1795_v41 = vadd.f32 %v1754_v43, %v1683_v61 }
 0x360   :  { %v1647_v44 = vpop.permute.xlu1 %1646 }
 0x361   :  { %1811 = vst.msk [vmem:[%s4301_s4 + $0x48] sm:$0xff] %vm1369_vm0, %v1795_v41  ;;  %v1684_v34 = vmul.f32 %v1647_v44, %v4085_v62 }
 0x363   :  { %v1796_v42 = vadd.f32 %v1759_v13, %v1684_v34 }
 0x364   :  { %v1652_v30 = vpop.permute.xlu0 %1651 }
 0x365   :  { %1812 = vst.msk [vmem:[%s4301_s4 + $0x50] sm:$0xff] %vm1369_vm0, %v1796_v42  ;;  %v1685_v18 = vmul.f32 %v1652_v30, %v4091_v32 }
 0x367   :  { %v1797_v35 = vadd.f32 %v1764_v63, %v1685_v18 }
 0x368   :  { %v1657_v4 = vpop.permute.xlu1 %1656 }
 0x369   :  { %1813 = vst.msk [vmem:[%s4301_s4 + $0x58] sm:$0xff] %vm1369_vm0, %v1797_v35  ;;  %v1686_v17 = vmul.f32 %v1657_v4, %v4097_v25 }
 0x36b   :  { %v1798_v60 = vadd.f32 %v1769_v59, %v1686_v17 }
 0x36c   :  { %v1662_v62 = vpop.permute.xlu0 %1661 }
 0x36d   :  { %1814 = vst.msk [vmem:[%s4301_s4 + $0x60] sm:$0xff] %vm1369_vm0, %v1798_v60  ;;  %v1687_v36 = vmul.f32 %v1662_v62, %v4103_v54 }
 0x36f   :  { %v1799_v47 = vadd.f32 %v1774_v53, %v1687_v36 }
 0x370   :  { %v1667_v32 = vpop.permute.xlu1 %1666 }
 0x371   :  { %1815 = vst.msk [vmem:[%s4301_s4 + $0x68] sm:$0xff] %vm1369_vm0, %v1799_v47  ;;  %v1688_v1 = vmul.f32 %v1667_v32, %v4109_v39 }
 0x374   :  { %v1779_v27 = vpop.permute.xlu1 %1778 }
 0x375   :  { %v1800_v25 = vadd.f32 %v1779_v27, %v1688_v1 }
 0x377   :  { %1816 = vst.msk [vmem:[%s4301_s4 + $0x70] sm:$0xff] %vm1369_vm0, %v1800_v25 }
 0x3ad   :  { %v1672_v29 = vpop.permute.xlu0 %1671 }
 0x3ae   :  { %v1689_v31 = vmul.f32 %v1672_v29, %v4149_v37 }
 0x3b1   :  { %v1784_v54 = vpop.permute.xlu0 %1783 }
 0x3b2   :  { %v1801_v22 = vadd.f32 %v1784_v54, %v1689_v31 }
 0x3b4   :  { %1817 = vst.msk [vmem:[%s4301_s4 + $0x78] sm:$0xff] %vm1369_vm0, %v1801_v22 }

</bundles_post_ra>
